<compile_context>
chip_gen: v7x
topology: tpu7x:2x2x1
jax: 0.10.0
libtpu: 0.0.40
codegen_flags: <defaults>
</compile_context>

<pallas_src>
import jax
import jax.numpy as jnp
from jax.experimental import pallas as pl
from jax.experimental.pallas import tpu as pltpu

D_MODEL = 768   # fixed by nn.Linear(768, hidden) in the module
TB = 8          # batch rows per grid step (sublane multiple, MXU M-dim)
LANE = 128


def _round_up(x, m):
    return ((x + m - 1) // m) * m


def _tile_budget():
    """Pick (max sequence tile, vmem_limit_bytes) per TPU generation."""
    try:
        vmem_cap = int(pltpu.get_tpu_info().vmem_capacity_bytes)
    except Exception:
        vmem_cap = 64 * 1024 * 1024            # conservative (v7x-sized) fallback
    if vmem_cap >= 100 * 1024 * 1024:          # v5e / v6e: 128 MiB physical VMEM
        return 1024, 80 * 1024 * 1024
    return 512, 40 * 1024 * 1024               # v7x: 64 MiB per TensorCore


def siamese_head_kernel(nvt_ref, emb_ref, mask_ref, wp_ref, bp_ref,
                        w1_ref, b1_ref, w2_ref, b2_ref,
                        out_ref, acc_ref, den_ref):
    # nvt_ref : (nb,) i32 SMEM   number of valid sequence tiles per batch tile
    # emb_ref : (TB, TS, D) bf16 streamed token embeddings (surrogate input)
    # mask_ref: (TB, TS)    f32  attention-mask tile
    # wp_ref  : (D, D) bf16, bp_ref: (1, D) f32   surrogate pooler dense
    # w1_ref  : (D, Hp) bf16, b1_ref: (1, Hp) f32 FC1 (hidden padded to Hp)
    # w2_ref  : (1, Hp) bf16                      FC2 weight (transposed, 0-pad)
    # b2_ref  : (1, 1) f32                        FC2 bias
    # out_ref : (TB, 1) f32                       sigmoid probabilities
    # acc_ref : (TB, D) f32 scratch               masked-sum accumulator
    # den_ref : (TB, 1) f32 scratch               mask-count accumulator
    i = pl.program_id(0)
    k = pl.program_id(1)

    @pl.when(k == 0)
    def _():
        acc_ref[...] = jnp.zeros_like(acc_ref)
        den_ref[...] = jnp.zeros_like(den_ref)

    # ---- streamed masked sum over this sequence tile (MXU contraction) ----
    # Skipped entirely (and no fresh DMA is issued, thanks to the clamped
    # index_map) for trailing all-padding sequence tiles.
    @pl.when(k < nvt_ref[i])
    def _():
        mask = mask_ref[...]                                      # (TB, TS) f32
        m3 = mask.astype(jnp.bfloat16)[:, None, :]                # (TB, 1, TS)
        contrib = jnp.einsum('bqs,bsd->bqd', m3, emb_ref[...],
                             preferred_element_type=jnp.float32)  # (TB, 1, D)
        acc_ref[...] += contrib[:, 0, :]
        den_ref[...] += jnp.sum(mask, axis=1, keepdims=True)      # (TB, 1)

    # ---- finalize: pooler + FC1 + FC2 on the last sequence step ----
    @pl.when(k == pl.num_programs(1) - 1)
    def _():
        denom = jnp.maximum(den_ref[...], 1.0)                    # (TB, 1)
        pooled = acc_ref[...] / denom                             # exact mean

        # BERT/Longformer-style surrogate pooler: dense(768,768) + tanh
        pooled = jnp.tanh(
            jnp.dot(pooled.astype(jnp.bfloat16), wp_ref[...],
                    preferred_element_type=jnp.float32) + bp_ref[...])

        # FC1 + ReLU (hidden padded to Hp lanes; padded cols are exact zeros)
        h = jnp.dot(pooled.astype(jnp.bfloat16), w1_ref[...],
                    preferred_element_type=jnp.float32) + b1_ref[...]
        h = jnp.maximum(h, 0.0)                                   # (TB, Hp)

        # FC2 + sigmoid (out_features = 1 -> lane reduction; padded cols are 0)
        logit = jnp.sum(h * w2_ref[...].astype(jnp.float32), axis=-1,
                        keepdims=True) + b2_ref[0, 0]
        out_ref[...] = jax.nn.sigmoid(logit)


def siamese_margin_forward(input_ids, attention_mask, params):
    """Full forward pass. The embedding gather stays as plain-JAX glue; the
    streamed pooling reduction and all matmuls / activations run in Pallas."""
    B, S = input_ids.shape
    Hp = params["w1"].shape[1]                       # hidden padded to 128
    ts_max, vmem_limit = _tile_budget()

    # --- pad batch to a sublane multiple and sequence to a tile multiple ---
    B_pad = _round_up(B, TB)
    if S <= ts_max:
        TS = _round_up(S, 8)
        S_pad = TS
    else:
        TS = ts_max
        S_pad = _round_up(S, TS)

    ids_p = jnp.pad(input_ids, ((0, B_pad - B), (0, S_pad - S)))
    mask_p = jnp.pad(attention_mask.astype(jnp.float32),
                     ((0, B_pad - B), (0, S_pad - S)))

    emb = params["embedding"][ids_p]                 # (B_pad, S_pad, D) bf16

    nb, nk = B_pad // TB, S_pad // TS

    # Per-batch-tile count of sequence tiles up to (and including) the last
    # tile containing any attended token; later tiles are skipped.
    tile_tok = mask_p.reshape(nb, TB, nk, TS).sum(axis=(1, 3))     # (nb, nk)
    nvt = jnp.max(jnp.where(tile_tok > 0.0,
                            jnp.arange(1, nk + 1, dtype=jnp.int32)[None, :],
                            jnp.int32(0)), axis=1)                  # (nb,) i32

    def stream_map(i, k, nvt_ref):
        kk = jnp.maximum(jnp.minimum(k, nvt_ref[i] - 1), 0)
        return i, kk, 0

    def mask_map(i, k, nvt_ref):
        kk = jnp.maximum(jnp.minimum(k, nvt_ref[i] - 1), 0)
        return i, kk

    const2 = lambda i, k, nvt_ref: (0, 0)            # resident weights

    out = pl.pallas_call(
        siamese_head_kernel,
        out_shape=jax.ShapeDtypeStruct((B_pad, 1), jnp.float32),
        grid_spec=pltpu.PrefetchScalarGridSpec(
            num_scalar_prefetch=1,
            grid=(nb, nk),
            in_specs=[
                pl.BlockSpec((TB, TS, D_MODEL), stream_map),       # emb  bf16
                pl.BlockSpec((TB, TS), mask_map),                  # mask f32
                pl.BlockSpec((D_MODEL, D_MODEL), const2),          # wp   bf16
                pl.BlockSpec((1, D_MODEL), const2),                # bp   f32
                pl.BlockSpec((D_MODEL, Hp), const2),               # w1   bf16
                pl.BlockSpec((1, Hp), const2),                     # b1   f32
                pl.BlockSpec((1, Hp), const2),                     # w2   bf16
                pl.BlockSpec((1, 1), const2),                      # b2   f32
            ],
            out_specs=pl.BlockSpec((TB, 1), lambda i, k, nvt_ref: (i, 0)),
            scratch_shapes=[
                pltpu.VMEM((TB, D_MODEL), jnp.float32),   # masked-sum acc
                pltpu.VMEM((TB, 1), jnp.float32),         # mask-count acc
            ],
        ),
        compiler_params=pltpu.CompilerParams(
            dimension_semantics=("parallel", "arbitrary"),
            vmem_limit_bytes=vmem_limit,
        ),
    )(nvt, emb, mask_p,
      params["wp"], params["bp"], params["w1"], params["b1"],
      params["w2"], params["b2"])
    return out[:B, 0]                                # squeeze(1) -> (B,)


def init_params(key, vocab_size, hidden_size):
    ks = jax.random.split(key, 4)
    scale = 0.02
    Hp = _round_up(hidden_size, LANE)

    # FC1 / FC2 weights zero-padded in the hidden dimension so padded lanes
    # contribute exactly zero through ReLU and the FC2 lane reduction.
    w1 = jnp.zeros((D_MODEL, Hp), jnp.float32).at[:, :hidden_size].set(
        scale * jax.random.normal(ks[2], (D_MODEL, hidden_size), jnp.float32))
    w2 = jnp.zeros((1, Hp), jnp.float32).at[:, :hidden_size].set(
        scale * jax.random.normal(ks[3], (1, hidden_size), jnp.float32))

    return {
        # embeddings / weights stored bf16: halves HBM + VMEM traffic; all
        # matmuls accumulate in f32 (preferred_element_type).
        "embedding": (scale * jax.random.normal(
            ks[0], (vocab_size, D_MODEL), jnp.float32)).astype(jnp.bfloat16),
        "wp": (scale * jax.random.normal(
            ks[1], (D_MODEL, D_MODEL), jnp.float32)).astype(jnp.bfloat16),
        "bp": jnp.zeros((1, D_MODEL), jnp.float32),
        "w1": w1.astype(jnp.bfloat16),
        "b1": jnp.zeros((1, Hp), jnp.float32),
        "w2": w2.astype(jnp.bfloat16),     # FC2 weight transposed, lane-padded
        "b2": jnp.zeros((1, 1), jnp.float32),
    }


if __name__ == "__main__":
    B, S, H, VOCAB = 2, 8, 32, 100   # small shapes; args.hidden_size = 32

    key = jax.random.PRNGKey(0)
    k_param, k_ids, k_len = jax.random.split(key, 3)

    params = init_params(k_param, VOCAB, H)

    input_ids = jax.random.randint(k_ids, (B, S), 0, VOCAB, dtype=jnp.int32)
    lengths = jnp.array([S, S - 3], dtype=jnp.int32)     # ragged attention masks
    attention_mask = (jnp.arange(S)[None, :] < lengths[:, None]).astype(jnp.int32)

    probs = jax.jit(siamese_margin_forward)(input_ids, attention_mask, params)
    jax.block_until_ready(probs)

    assert probs.shape == (B,)
    assert bool(jnp.all((probs >= 0.0) & (probs <= 1.0)))
    print("KERNEL_OK")
</pallas_src>

<mosaic_0001>
module attributes {stable_mosaic.version = 11 : i64} {
  func.func @siamese_head_kernel(%arg0: i32, %arg1: i32, %arg2: memref<1xi32, #tpu.memory_space<smem>>, %arg3: memref<8x8x768xbf16, #tpu.memory_space<vmem>>, %arg4: memref<8x8xf32, #tpu.memory_space<vmem>>, %arg5: memref<768x768xbf16, #tpu.memory_space<vmem>>, %arg6: memref<1x768xf32, #tpu.memory_space<vmem>>, %arg7: memref<768x128xbf16, #tpu.memory_space<vmem>>, %arg8: memref<1x128xf32, #tpu.memory_space<vmem>>, %arg9: memref<1x128xbf16, #tpu.memory_space<vmem>>, %arg10: memref<1x1xf32, #tpu.memory_space<vmem>>, %arg11: memref<8x1xf32, #tpu.memory_space<vmem>>, %arg12: memref<8x768xf32, #tpu.memory_space<vmem>>, %arg13: memref<8x1xf32, #tpu.memory_space<vmem>>) attributes {dimension_semantics = [#tpu.dimension_semantics<parallel>, #tpu.dimension_semantics<arbitrary>], iteration_bounds = array<i64: 1, 1>, scalar_prefetch = 1 : i64, scratch_operands = 2 : i64, tpu.core_type = #tpu.core_type<tc>, window_params = [{transform_indices = @transform_0, window_bounds = array<i64: 8, 8, 768>}, {transform_indices = @transform_1, window_bounds = array<i64: 8, 8>}, {pipeline_mode = #tpu.pipeline_mode<synchronous>, transform_indices = @transform_2, window_bounds = array<i64: 768, 768>}, {pipeline_mode = #tpu.pipeline_mode<synchronous>, transform_indices = @transform_3, window_bounds = array<i64: 1, 768>}, {pipeline_mode = #tpu.pipeline_mode<synchronous>, transform_indices = @transform_4, window_bounds = array<i64: 768, 128>}, {pipeline_mode = #tpu.pipeline_mode<synchronous>, transform_indices = @transform_5, window_bounds = array<i64: 1, 128>}, {pipeline_mode = #tpu.pipeline_mode<synchronous>, transform_indices = @transform_6, window_bounds = array<i64: 1, 128>}, {pipeline_mode = #tpu.pipeline_mode<synchronous>, transform_indices = @transform_7, window_bounds = array<i64: 1, 1>}, {transform_indices = @transform_8, window_bounds = array<i64: 8, 1>}]} {
    %c0_i32 = arith.constant 0 : i32
    %0 = arith.cmpi eq, %arg1, %c0_i32 : i32
    %1 = arith.extui %0 : i1 to i32
    %c0_i32_0 = arith.constant 0 : i32
    %2 = arith.cmpi ne, %1, %c0_i32_0 : i32
    scf.if %2 {
      %cst = arith.constant 0.000000e+00 : f32
      %11 = vector.broadcast %cst : f32 to vector<8x768xf32>
      %c0 = arith.constant 0 : index
      %c0_4 = arith.constant 0 : index
      %12 = vector.load %arg12[%c0, %c0_4] : memref<8x768xf32, #tpu.memory_space<vmem>>, vector<8x768xf32>
      tpu.vector_store %arg12[%c0, %c0_4], %11 {strides = array<i32>} : memref<8x768xf32, #tpu.memory_space<vmem>>, vector<8x768xf32>,
      %cst_5 = arith.constant 0.000000e+00 : f32
      %13 = vector.broadcast %cst_5 : f32 to vector<8x1xf32>
      %c0_6 = arith.constant 0 : index
      %c0_7 = arith.constant 0 : index
      %14 = vector.load %arg13[%c0_6, %c0_7] : memref<8x1xf32, #tpu.memory_space<vmem>>, vector<8x1xf32>
      tpu.vector_store %arg13[%c0_6, %c0_7], %13 {strides = array<i32>} : memref<8x1xf32, #tpu.memory_space<vmem>>, vector<8x1xf32>,
    } else {
    }
    %3 = arith.index_cast %arg0 : i32 to index
    %4 = memref.load %arg2[%3] : memref<1xi32, #tpu.memory_space<smem>>
    %5 = arith.cmpi slt, %arg1, %4 : i32
    %6 = arith.extui %5 : i1 to i32
    %c0_i32_1 = arith.constant 0 : i32
    %7 = arith.cmpi ne, %6, %c0_i32_1 : i32
    scf.if %7 {
      %c0 = arith.constant 0 : index
      %c0_4 = arith.constant 0 : index
      %11 = vector.load %arg4[%c0, %c0_4] : memref<8x8xf32, #tpu.memory_space<vmem>>, vector<8x8xf32>
      %12 = arith.truncf %11 : vector<8x8xf32> to vector<8x8xbf16>
      %13 = vector.shape_cast %12 : vector<8x8xbf16> to vector<8x1x8xbf16>
      %c0_5 = arith.constant 0 : index
      %c0_6 = arith.constant 0 : index
      %c0_7 = arith.constant 0 : index
      %14 = vector.load %arg3[%c0_5, %c0_6, %c0_7] : memref<8x8x768xbf16, #tpu.memory_space<vmem>>, vector<8x8x768xbf16>
      "tpu.trace_start"() <{level = 10 : i32, message = "bqs,bsd->bqd"}> : () -> ()
      %cst = arith.constant dense<0.000000e+00> : vector<8x1x768xf32>
      %15 = tpu.matmul %13, %14, %cst {dimension_numbers = #tpu.dot_dimension_numbers<[2], [1], [1], [2], [0, 0, 0, 1, 1, 2], [0], [0]>} : vector<8x1x8xbf16>, vector<8x8x768xbf16>, vector<8x1x768xf32> -> vector<8x1x768xf32>
      "tpu.trace_stop"() : () -> ()
      %c0_8 = arith.constant 0 : index
      %c0_9 = arith.constant 0 : index
      %16 = vector.load %arg12[%c0_8, %c0_9] : memref<8x768xf32, #tpu.memory_space<vmem>>, vector<8x768xf32>
      %17 = vector.shape_cast %15 : vector<8x1x768xf32> to vector<8x768xf32>
      %18 = arith.addf %16, %17 : vector<8x768xf32>
      %c0_10 = arith.constant 0 : index
      %c0_11 = arith.constant 0 : index
      %19 = vector.load %arg12[%c0_10, %c0_11] : memref<8x768xf32, #tpu.memory_space<vmem>>, vector<8x768xf32>
      tpu.vector_store %arg12[%c0_10, %c0_11], %18 {strides = array<i32>} : memref<8x768xf32, #tpu.memory_space<vmem>>, vector<8x768xf32>,
      %c0_12 = arith.constant 0 : index
      %c0_13 = arith.constant 0 : index
      %20 = vector.load %arg13[%c0_12, %c0_13] : memref<8x1xf32, #tpu.memory_space<vmem>>, vector<8x1xf32>
      %cst_14 = arith.constant dense<0.000000e+00> : vector<8xf32>
      %21 = vector.multi_reduction <add>, %11, %cst_14 [1] : vector<8x8xf32> to vector<8xf32>
      %22 = vector.shape_cast %21 : vector<8xf32> to vector<8x1xf32>
      %23 = arith.addf %20, %22 : vector<8x1xf32>
      %c0_15 = arith.constant 0 : index
      %c0_16 = arith.constant 0 : index
      %24 = vector.load %arg13[%c0_15, %c0_16] : memref<8x1xf32, #tpu.memory_space<vmem>>, vector<8x1xf32>
      tpu.vector_store %arg13[%c0_15, %c0_16], %23 {strides = array<i32>} : memref<8x1xf32, #tpu.memory_space<vmem>>, vector<8x1xf32>,
    } else {
    }
    %c0_i32_2 = arith.constant 0 : i32
    %8 = arith.cmpi eq, %arg1, %c0_i32_2 : i32
    %9 = arith.extui %8 : i1 to i32
    %c0_i32_3 = arith.constant 0 : i32
    %10 = arith.cmpi ne, %9, %c0_i32_3 : i32
    scf.if %10 {
      %c0 = arith.constant 0 : index
      %c0_4 = arith.constant 0 : index
      %11 = vector.load %arg13[%c0, %c0_4] : memref<8x1xf32, #tpu.memory_space<vmem>>, vector<8x1xf32>
      %cst = arith.constant 1.000000e+00 : f32
      %12 = vector.broadcast %cst : f32 to vector<8x1xf32>
      %13 = arith.maximumf %11, %12 : vector<8x1xf32>
      %c0_5 = arith.constant 0 : index
      %c0_6 = arith.constant 0 : index
      %14 = vector.load %arg12[%c0_5, %c0_6] : memref<8x768xf32, #tpu.memory_space<vmem>>, vector<8x768xf32>
      %15 = vector.broadcast %13 : vector<8x1xf32> to vector<8x768xf32>
      %16 = arith.divf %14, %15 : vector<8x768xf32>
      %17 = arith.truncf %16 : vector<8x768xf32> to vector<8x768xbf16>
      %c0_7 = arith.constant 0 : index
      %c0_8 = arith.constant 0 : index
      %18 = vector.load %arg5[%c0_7, %c0_8] : memref<768x768xbf16, #tpu.memory_space<vmem>>, vector<768x768xbf16>
      %cst_9 = arith.constant dense<0.000000e+00> : vector<8x768xf32>
      %19 = tpu.matmul %17, %18, %cst_9 {dimension_numbers = #tpu.dot_dimension_numbers<[1], [0], [0], [1], [0, 0, 1, 1], [], []>} : vector<8x768xbf16>, vector<768x768xbf16>, vector<8x768xf32> -> vector<8x768xf32>
      %c0_10 = arith.constant 0 : index
      %c0_11 = arith.constant 0 : index
      %20 = vector.load %arg6[%c0_10, %c0_11] : memref<1x768xf32, #tpu.memory_space<vmem>>, vector<1x768xf32>
      %21 = vector.broadcast %20 : vector<1x768xf32> to vector<8x768xf32>
      %22 = arith.addf %19, %21 : vector<8x768xf32>
      %23 = math.tanh %22 : vector<8x768xf32>
      %24 = arith.truncf %23 : vector<8x768xf32> to vector<8x768xbf16>
      %c0_12 = arith.constant 0 : index
      %c0_13 = arith.constant 0 : index
      %25 = vector.load %arg7[%c0_12, %c0_13] : memref<768x128xbf16, #tpu.memory_space<vmem>>, vector<768x128xbf16>
      %cst_14 = arith.constant dense<0.000000e+00> : vector<8x128xf32>
      %26 = tpu.matmul %24, %25, %cst_14 {dimension_numbers = #tpu.dot_dimension_numbers<[1], [0], [0], [1], [0, 0, 1, 1], [], []>} : vector<8x768xbf16>, vector<768x128xbf16>, vector<8x128xf32> -> vector<8x128xf32>
      %c0_15 = arith.constant 0 : index
      %c0_16 = arith.constant 0 : index
      %27 = vector.load %arg8[%c0_15, %c0_16] : memref<1x128xf32, #tpu.memory_space<vmem>>, vector<1x128xf32>
      %28 = vector.broadcast %27 : vector<1x128xf32> to vector<8x128xf32>
      %29 = arith.addf %26, %28 : vector<8x128xf32>
      %cst_17 = arith.constant 0.000000e+00 : f32
      %30 = vector.broadcast %cst_17 : f32 to vector<8x128xf32>
      %31 = arith.maximumf %29, %30 : vector<8x128xf32>
      %c0_18 = arith.constant 0 : index
      %c0_19 = arith.constant 0 : index
      %32 = vector.load %arg9[%c0_18, %c0_19] : memref<1x128xbf16, #tpu.memory_space<vmem>>, vector<1x128xbf16>
      %33 = arith.extf %32 : vector<1x128xbf16> to vector<1x128xf32>
      %34 = vector.broadcast %33 : vector<1x128xf32> to vector<8x128xf32>
      %35 = arith.mulf %31, %34 : vector<8x128xf32>
      %cst_20 = arith.constant dense<0.000000e+00> : vector<8xf32>
      %36 = vector.multi_reduction <add>, %35, %cst_20 [1] : vector<8x128xf32> to vector<8xf32>
      %37 = vector.shape_cast %36 : vector<8xf32> to vector<8x1xf32>
      %c0_21 = arith.constant 0 : index
      %c0_22 = arith.constant 0 : index
      %38 = vector.load %arg10[%c0_21, %c0_22] : memref<1x1xf32, #tpu.memory_space<vmem>>, vector<1x1xf32>
      %39 = vector.extract %38[0, 0] : f32 from vector<1x1xf32>
      %40 = vector.broadcast %39 : f32 to vector<8x1xf32>
      %41 = arith.addf %37, %40 : vector<8x1xf32>
      %42 = arith.negf %41 : vector<8x1xf32>
      %43 = math.exp %42 : vector<8x1xf32>
      %cst_23 = arith.constant 1.000000e+00 : f32
      %44 = vector.broadcast %cst_23 : f32 to vector<8x1xf32>
      %45 = arith.addf %44, %43 : vector<8x1xf32>
      %46 = arith.divf %44, %45 : vector<8x1xf32>
      %c0_24 = arith.constant 0 : index
      %c0_25 = arith.constant 0 : index
      %47 = vector.load %arg11[%c0_24, %c0_25] : memref<8x1xf32, #tpu.memory_space<vmem>>, vector<8x1xf32>
      tpu.vector_store %arg11[%c0_24, %c0_25], %46 {strides = array<i32>} : memref<8x1xf32, #tpu.memory_space<vmem>>, vector<8x1xf32>,
    } else {
    }
    return
  }
  func.func @transform_0(%arg0: i32, %arg1: i32, %arg2: memref<1xi32, #tpu.memory_space<smem>>) -> (i32, i32, i32) {
    %0 = arith.index_cast %arg0 : i32 to index
    %1 = memref.load %arg2[%0] : memref<1xi32, #tpu.memory_space<smem>>
    %c1_i32 = arith.constant 1 : i32
    %2 = arith.subi %1, %c1_i32 : i32
    %3 = arith.minsi %arg1, %2 : i32
    %c0_i32 = arith.constant 0 : i32
    %4 = arith.maxsi %3, %c0_i32 : i32
    %c0_i32_0 = arith.constant 0 : i32
    %c0_i32_1 = arith.constant 0 : i32
    return %arg0, %4, %c0_i32_0 : i32, i32, i32
  }
  func.func @transform_1(%arg0: i32, %arg1: i32, %arg2: memref<1xi32, #tpu.memory_space<smem>>) -> (i32, i32) {
    %0 = arith.index_cast %arg0 : i32 to index
    %1 = memref.load %arg2[%0] : memref<1xi32, #tpu.memory_space<smem>>
    %c1_i32 = arith.constant 1 : i32
    %2 = arith.subi %1, %c1_i32 : i32
    %3 = arith.minsi %arg1, %2 : i32
    %c0_i32 = arith.constant 0 : i32
    %4 = arith.maxsi %3, %c0_i32 : i32
    %c0_i32_0 = arith.constant 0 : i32
    return %arg0, %4 : i32, i32
  }
  func.func @transform_2(%arg0: i32, %arg1: i32, %arg2: memref<1xi32, #tpu.memory_space<smem>>) -> (i32, i32) {
    %c0_i32 = arith.constant 0 : i32
    %c0_i32_0 = arith.constant 0 : i32
    %c0_i32_1 = arith.constant 0 : i32
    return %c0_i32, %c0_i32_0 : i32, i32
  }
  func.func @transform_3(%arg0: i32, %arg1: i32, %arg2: memref<1xi32, #tpu.memory_space<smem>>) -> (i32, i32) {
    %c0_i32 = arith.constant 0 : i32
    %c0_i32_0 = arith.constant 0 : i32
    %c0_i32_1 = arith.constant 0 : i32
    return %c0_i32, %c0_i32_0 : i32, i32
  }
  func.func @transform_4(%arg0: i32, %arg1: i32, %arg2: memref<1xi32, #tpu.memory_space<smem>>) -> (i32, i32) {
    %c0_i32 = arith.constant 0 : i32
    %c0_i32_0 = arith.constant 0 : i32
    %c0_i32_1 = arith.constant 0 : i32
    return %c0_i32, %c0_i32_0 : i32, i32
  }
  func.func @transform_5(%arg0: i32, %arg1: i32, %arg2: memref<1xi32, #tpu.memory_space<smem>>) -> (i32, i32) {
    %c0_i32 = arith.constant 0 : i32
    %c0_i32_0 = arith.constant 0 : i32
    %c0_i32_1 = arith.constant 0 : i32
    return %c0_i32, %c0_i32_0 : i32, i32
  }
  func.func @transform_6(%arg0: i32, %arg1: i32, %arg2: memref<1xi32, #tpu.memory_space<smem>>) -> (i32, i32) {
    %c0_i32 = arith.constant 0 : i32
    %c0_i32_0 = arith.constant 0 : i32
    %c0_i32_1 = arith.constant 0 : i32
    return %c0_i32, %c0_i32_0 : i32, i32
  }
  func.func @transform_7(%arg0: i32, %arg1: i32, %arg2: memref<1xi32, #tpu.memory_space<smem>>) -> (i32, i32) {
    %c0_i32 = arith.constant 0 : i32
    %c0_i32_0 = arith.constant 0 : i32
    %c0_i32_1 = arith.constant 0 : i32
    return %c0_i32, %c0_i32_0 : i32, i32
  }
  func.func @transform_8(%arg0: i32, %arg1: i32, %arg2: memref<1xi32, #tpu.memory_space<smem>>) -> (i32, i32) {
    %c0_i32 = arith.constant 0 : i32
    %c0_i32_0 = arith.constant 0 : i32
    return %arg0, %c0_i32 : i32, i32
  }
}

</mosaic_0001>

<bundles_post_ra>
// kernel: siamese_margin_forward.1
= control target key start
LH: loop header
LB: loop body
LE: loop exit
PB: predicated region body
PF: predicated region fallthrough
CT: control target
= control target key end

     0   :  { %s6127_s0 = inlined_call_operand.<no memory space> [shape: s32[1], index: 0, kind: input, shape index: {}]   ;;  %s6128_s1 = inlined_call_operand.vmem [shape: bf16[8,8,768], index: 1, kind: input, shape index: {}]   ;;  %s6129_s2 = inlined_call_operand.vmem [shape: f32[8,8], index: 2, kind: input, shape index: {}]   ;;  %s6130_s3 = inlined_call_operand.hbm [shape: bf16[768,768], index: 3, kind: input, shape index: {}]   ;;  %s6131_s4 = inlined_call_operand.hbm [shape: f32[1,768], index: 4, kind: input, shape index: {}]   ;;  %s6132_s5 = inlined_call_operand.hbm [shape: bf16[768,128], index: 5, kind: input, shape index: {}]   ;;  %s6133_s6 = inlined_call_operand.hbm [shape: f32[1,128], index: 6, kind: input, shape index: {}]   ;;  %s6134_s7 = inlined_call_operand.hbm [shape: bf16[1,128], index: 7, kind: input, shape index: {}]   ;;  %s6135_s8 = inlined_call_operand.<no memory space> [shape: f32[1,1], index: 8, kind: input, shape index: {}]   ;;  %s6136_s9 = inlined_call_operand.vmem [shape: f32[8,1], index: 9, kind: output, shape index: {}]  }
   0x1   :  { %v15_v0 = vstv %s6135_s8 }
   0x2   :  { %16 = vst [vmem:[#allocation6] sm:$0x1] %v15_v0 }
   0x3   :  { %17 = vsyncpa [#allocation8], 0 }
   0x4   :  { %18 = vsyncpa [#allocation10], 0 }
   0x5   :  { %19 = vsyncpa [#allocation13], 0  ;;  %s5693_s11 = smov [#allocation9]   ;;  %s5694_s13 = smov [#allocation12]  }
   0x6   :  { %s75_s12 = sshll.u32 %s5693_s11, 4  ;;  %s97_s14 = sshll.u32 %s5694_s13, 4  ;;  %s76_s12 = int_to_ptr.vmem [resolvable:$true] %s75_s12  ;;  %s98_s14 = int_to_ptr.vmem [resolvable:$true] %s97_s14 }
   0x7   :  { %s5577_s17 = scalar_lea.hbm %s6131_s4, 96 }
   0x8   :  { %p5578_p0 = scmp.ne.s32.totalorder %s6131_s4, %s5577_s17  ;;  %p5581_p1 = scmp.lt.u32.totalorder %s5577_s17, %s6131_s4 }
   0xa   :  { %p5583_p2 = pnand %p5581_p1, %p5578_p0 }
   0xc   :  { %5586 = shalt.err (!%p5583_p2)
}
   0xd   :  { %s5587_s21 = scalar_lea.vmem %s76_s12, 96  ;;  %p5592_p4 = scmp.lt.s32.totalorder %s76_s12, %s76_s12 }
   0xe   :  { %p5588_p3 = scmp.ne.s32.totalorder %s76_s12, %s5587_s21  ;;  %p5593_p5 = scmp.lt.s32.totalorder %s5587_s21, %s5587_s21 }
  0x10   :  { %p5594_p6 = por %p5593_p5, %p5592_p4 }
  0x12   :  { %p5595_p7 = pnand %p5594_p6, %p5588_p3 }
  0x14   :  { %5598 = shalt.err (!%p5595_p7)
}
  0x15   :  { %78 = dma.hbm_to_vmem [thread:$0]  %s6131_s4, 96, %s76_s12, [#allocation10]  }
  0x16   :  { %s5599_s26 = scalar_lea.hbm %s6133_s6, 16 }
  0x17   :  { %p5600_p8 = scmp.ne.s32.totalorder %s6133_s6, %s5599_s26  ;;  %p5603_p9 = scmp.lt.u32.totalorder %s5599_s26, %s6133_s6 }
  0x19   :  { %p5605_p10 = pnand %p5603_p9, %p5600_p8 }
  0x1b   :  { %5608 = shalt.err (!%p5605_p10)
}
  0x1c   :  { %s5609_s10 = scalar_lea.vmem %s98_s14, 16  ;;  %s5613_s11 = scalar_lea.vmem %s98_s14, 32 }
  0x1d   :  { %p5610_p11 = scmp.ne.s32.totalorder %s98_s14, %s5609_s10  ;;  %p5614_p12 = scmp.lt.s32.totalorder %s98_s14, %s98_s14 }
  0x1e   :  { %p5615_p13 = scmp.lt.s32.totalorder %s5613_s11, %s5609_s10 }
  0x20   :  { %p5616_p0 = por %p5615_p13, %p5614_p12 }
  0x22   :  { %p5617_p1 = pnand %p5616_p0, %p5610_p11 }
  0x24   :  { %5620 = shalt.err (!%p5617_p1)
}
  0x25   :  { %100 = dma.hbm_to_vmem [thread:$0]  %s6133_s6, 16, %s98_s14, [#allocation13]  }
  0x26   :  { %s5695_s13 = smov [#allocation7]   ;;  %s5621_s18 = scalar_lea.hbm %s6130_s3, 36864 }
  0x27   :  { %s62_s15 = sshll.u32 %s5695_s13, 4  ;;  %p5622_p2 = scmp.ne.s32.totalorder %s6130_s3, %s5621_s18  ;;  %s63_s15 = int_to_ptr.vmem [resolvable:$true] %s62_s15 }
  0x28   :  { %p5625_p3 = scmp.lt.u32.totalorder %s5621_s18, %s6130_s3 }
  0x2a   :  { %p5627_p4 = pnand %p5625_p3, %p5622_p2 }
  0x2c   :  { %5630 = shalt.err (!%p5627_p4)
}
  0x2d   :  { %s5631_s22 = scalar_lea.vmem %s63_s15, 36864  ;;  %p5636_p6 = scmp.lt.s32.totalorder %s63_s15, %s63_s15 }
  0x2e   :  { %p5632_p5 = scmp.ne.s32.totalorder %s63_s15, %s5631_s22  ;;  %p5637_p7 = scmp.lt.s32.totalorder %s5631_s22, %s5631_s22 }
  0x30   :  { %p5638_p8 = por %p5637_p7, %p5636_p6 }
  0x32   :  { %p5639_p9 = pnand %p5638_p8, %p5632_p5 }
  0x34   :  { %5642 = shalt.err (!%p5639_p9)
}
  0x35   :  { %s5696_s6 = smov 384   ;;  %s5697_s14 = smov 24  }
  0x36   :  { %68 = dma.hbm_to_vmem [thread:$0]  %s6130_s3, 36864, %s63_s15, [#allocation8], %s5696_s6, %s5696_s6, %s5697_s14  }
  0x37   :  { %s5698_s25 = smov [#allocation11]   ;;  %s5643_s29 = scalar_lea.hbm %s6132_s5, 6144 }
  0x38   :  { %s84_s26 = sshll.u32 %s5698_s25, 4  ;;  %p5644_p10 = scmp.ne.s32.totalorder %s6132_s5, %s5643_s29  ;;  %s85_s26 = int_to_ptr.vmem [resolvable:$true] %s84_s26 }
  0x39   :  { %p5647_p11 = scmp.lt.u32.totalorder %s5643_s29, %s6132_s5 }
  0x3b   :  { %p5649_p12 = pnand %p5647_p11, %p5644_p10 }
  0x3d   :  { %5652 = shalt.err (!%p5649_p12)
}
  0x3e   :  { %s5653_s12 = scalar_lea.vmem %s85_s26, 6144  ;;  %p5658_p0 = scmp.lt.s32.totalorder %s85_s26, %s85_s26 }
  0x3f   :  { %p5654_p13 = scmp.ne.s32.totalorder %s85_s26, %s5653_s12  ;;  %p5659_p1 = scmp.lt.s32.totalorder %s5653_s12, %s5653_s12 }
  0x41   :  { %p5660_p2 = por %p5659_p1, %p5658_p0 }
  0x43   :  { %p5661_p3 = pnand %p5660_p2, %p5654_p13 }
  0x45   :  { %5664 = shalt.err (!%p5661_p3)
}
  0x46   :  { %s5699_s3 = smov 64   ;;  %s5700_s13 = smov 4  }
  0x47   :  { %90 = dma.hbm_to_vmem [thread:$0]  %s6132_s5, 6144, %s85_s26, [#allocation10], %s5699_s3, %s5699_s3, %s5700_s13  }
  0x48   :  { %s5701_s17 = smov [#allocation14]   ;;  %s5665_s8 = scalar_lea.hbm %s6134_s7, 16 }
  0x49   :  { %s107_s18 = sshll.u32 %s5701_s17, 4  ;;  %p5666_p4 = scmp.ne.s32.totalorder %s6134_s7, %s5665_s8  ;;  %s108_s18 = int_to_ptr.vmem [resolvable:$true] %s107_s18 }
  0x4a   :  { %p5669_p5 = scmp.lt.u32.totalorder %s5665_s8, %s6134_s7 }
  0x4c   :  { %p5671_p6 = pnand %p5669_p5, %p5666_p4 }
  0x4e   :  { %5674 = shalt.err (!%p5671_p6)
}
  0x4f   :  { %s5675_s23 = scalar_lea.vmem %s108_s18, 16  ;;  %s5679_s5 = scalar_lea.vmem %s108_s18, 32 }
  0x50   :  { %p5676_p7 = scmp.ne.s32.totalorder %s108_s18, %s5675_s23  ;;  %p5680_p8 = scmp.lt.s32.totalorder %s108_s18, %s108_s18 }
  0x51   :  { %p5681_p9 = scmp.lt.s32.totalorder %s5679_s5, %s5675_s23 }
  0x53   :  { %p5682_p10 = por %p5681_p9, %p5680_p8 }
  0x55   :  { %p5683_p11 = pnand %p5682_p10, %p5676_p7 }
  0x57   :  { %5686 = shalt.err (!%p5683_p11)
}
  0x58   :  { %110 = dma.hbm_to_vmem [thread:$0]  %s6134_s7, 16, %s108_s18, [#allocation13]  }
  0x59   :  { %5687 = dma.done.wait [#allocation8], 36864  }
  0x5a   :  { %5688 = vsyncadd [#allocation8], 4294930432 }
  0x5b   :  { %5689 = dma.done.wait [#allocation10], 6240  }
  0x5c   :  { %5690 = vsyncadd [#allocation10], 4294961056 }
  0x5d   :  { %5691 = dma.done.wait [#allocation13], 32  }
  0x5e   :  { %5692 = vsyncadd [#allocation13], 4294967264  ;;  %vm193_vm0 = vcmask 7168   ;;  %v5702_v1 = vmov 0.0   ;;  %p4482_p12 = scmp.le.s32.totalorder %s6127_s0, 0 }
  0x5f   :  { %187 = vst [vmem:[#allocation2] sm:$0xff] %v5702_v1  ;;  %188 = vst [vmem:[#allocation2 + $0x8] sm:$0xff] %v5702_v1  ;;  %v235_v2 = vld [vmem:[%s6128_s1] sm:$0xff] (!%p4482_p12)  ;;  %vm283_vm1 = vcmask (!%p4482_p12), 1043456   ;;  %v236_v3 = vld [vmem:[%s6128_s1 + $0x8] sm:$0xff] (!%p4482_p12)  ;;  %v206_v5 = vlaneseq (!%p4482_p12)  ;;  %v5703_v10 = vmov (!%p4482_p12), 0  }
  0x60   :  { %189 = vst [vmem:[#allocation2 + $0x10] sm:$0xff] %v5702_v1  ;;  %190 = vst [vmem:[#allocation2 + $0x18] sm:$0xff] %v5702_v1  ;;  %199 = sbr.rel (%p4482_p12) target bundleno = 419 (0x1a3), region = 61  ;;  %v237_v4 = vld [vmem:[%s6128_s1 + $0x10] sm:$0xff] (!%p4482_p12)  ;;  %v4485_v6 = vcombine.high (!%p4482_p12), %v235_v2, %v235_v2  ;;  %v4487_v7 = vcombine.high (!%p4482_p12), %v236_v3, %v236_v3  ;;  %v4484_v8 = vcombine.low (!%p4482_p12), %v235_v2, %v235_v2  ;;  %334 = vmatprep.mubr.bf16.mxu0 (!%p4482_p12), %v5703_v10  ;;  %v238_v11 = vld [vmem:[%s6128_s1 + $0x18] sm:$0xff] (!%p4482_p12)  ;;  %vm279_vm2 = vcmask (!%p4482_p12), 64512  }
  0x61   :  { %191 = vst [vmem:[#allocation2 + $0x20] sm:$0xff] %v5702_v1  ;;  %192 = vst [vmem:[#allocation2 + $0x28] sm:$0xff] %v5702_v1  ;;  %v4486_v9 = vcombine.low (!%p4482_p12), %v236_v3, %v236_v3  ;;  %375 = vmatprep.mubr.bf16.mxu1 (!%p4482_p12), %v5703_v10  ;;  %v4489_v12 = vcombine.high (!%p4482_p12), %v237_v4, %v237_v4  ;;  %v4497_v13 = vcombine.high (!%p4482_p12), %v238_v11, %v238_v11  ;;  %v200_v14 = vld [vmem:[%s6129_s2] sm:$0xff] (!%p4482_p12)  ;;  %v5704_v17 = vmov (!%p4482_p12), 1966171168   ;;  %v240_v31 = vld [vmem:[%s6128_s1 + $0x28] sm:$0xff] (!%p4482_p12) }
  0x62   :  { %194 = vst.msk [vmem:[#allocation3] sm:$0xff] %vm193_vm0, %v5702_v1  ;;  %4490 = vmatprep.subr.msk.bf16.mxu0 (!%p4482_p12), %vm283_vm1, %v4485_v6  ;;  %4492 = vmatprep.subr.msk.bf16.mxu1 (!%p4482_p12), %vm283_vm1, %v4487_v7  ;;  %v285_v15 = vsel (!%p4482_p12), %vm283_vm1, %v4484_v8, 0  ;;  %v204_v18 = vunpack.c.l.s4 (!%p4482_p12), %v5704_v17  ;;  %v207_v19 = vshrl.u32 (!%p4482_p12), %v206_v5, 7  ;;  %v1737_v20 = vsel (!%p4482_p12), %vm279_vm2, %v200_v14, 0.0  ;;  %v239_v30 = vld [vmem:[%s6128_s1 + $0x20] sm:$0xff] (!%p4482_p12)  ;;  %v241_v42 = vld [vmem:[%s6128_s1 + $0x30] sm:$0xff] (!%p4482_p12) }
  0x63   :  { %v291_v16 = vsel (!%p4482_p12), %vm283_vm1, %v4486_v9, 0  ;;  %303 = vmatpush1.bf16.msra.mxu0 (!%p4482_p12), %v285_v15  ;;  %v201_v21 = vpack.c.bf16 (!%p4482_p12), %v200_v14, %v200_v14  ;;  %1738 = vadd.xlane.f32.xlu0 (!%p4482_p12), %v1737_v20  ;;  %v4488_v27 = vcombine.low (!%p4482_p12), %v237_v4, %v237_v4  ;;  %v4496_v28 = vcombine.low (!%p4482_p12), %v238_v11, %v238_v11  ;;  %v242_v43 = vld [vmem:[%s6128_s1 + $0x38] sm:$0xff] (!%p4482_p12)  ;;  %v243_v51 = vld [vmem:[%s6128_s1 + $0x40] sm:$0xff] (!%p4482_p12)  ;;  %v244_v52 = vld [vmem:[%s6128_s1 + $0x48] sm:$0xff] (!%p4482_p12) }
  0x64   :  { %344 = vmatpush1.bf16.msra.mxu1 (!%p4482_p12), %v291_v16  ;;  %4494 = vmatprep.subr.msk.bf16.mxu0 (!%p4482_p12), %vm283_vm1, %v4489_v12  ;;  %v205_v22 = vunpack.c.0.s8 (!%p4482_p12), %v204_v18  ;;  %v5849_v26 = vsub.s32 (!%p4482_p12), 0, %v207_v19  ;;  %v4499_v36 = vcombine.high (!%p4482_p12), %v239_v30, %v239_v30  ;;  %v4501_v37 = vcombine.high (!%p4482_p12), %v240_v31, %v240_v31  ;;  %v245_v62 = vld [vmem:[%s6128_s1 + $0x50] sm:$0xff] (!%p4482_p12)  ;;  %v246_v63 = vld [vmem:[%s6128_s1 + $0x58] sm:$0xff] (!%p4482_p12)  ;;  %v247_v9 = vld [vmem:[%s6128_s1 + $0x60] sm:$0xff] (!%p4482_p12) }
  0x65   :  { %4502 = vmatprep.subr.msk.bf16.mxu1 (!%p4482_p12), %vm283_vm1, %v4497_v13  ;;  %v297_v34 = vsel (!%p4482_p12), %vm283_vm1, %v4488_v27, 0  ;;  %v449_v35 = vsel (!%p4482_p12), %vm283_vm1, %v4496_v28, 0  ;;  %v4498_v39 = vcombine.low (!%p4482_p12), %v239_v30, %v239_v30  ;;  %v4500_v40 = vcombine.low (!%p4482_p12), %v240_v31, %v240_v31  ;;  %v248_v11 = vld [vmem:[%s6128_s1 + $0x68] sm:$0xff] (!%p4482_p12)  ;;  %v249_v18 = vld [vmem:[%s6128_s1 + $0x70] sm:$0xff] (!%p4482_p12)  ;;  %v251_v30 = vld [vmem:[%s6128_s1 + $0x80] sm:$0xff] (!%p4482_p12) }
  0x66   :  { %v208_v23 = vsub.s32 (!%p4482_p12), %v205_v22, %v207_v19  ;;  %v4510_v46 = vcombine.high (!%p4482_p12), %v241_v42, %v241_v42  ;;  %v4512_v47 = vcombine.high (!%p4482_p12), %v242_v43, %v242_v43  ;;  %v4509_v49 = vcombine.low (!%p4482_p12), %v241_v42, %v241_v42  ;;  %v250_v19 = vld [vmem:[%s6128_s1 + $0x78] sm:$0xff] (!%p4482_p12)  ;;  %v252_v31 = vld [vmem:[%s6128_s1 + $0x88] sm:$0xff] (!%p4482_p12) }
  0x67   :  { %v455_v44 = vsel %vm283_vm1, %v4498_v39, 0  ;;  %v461_v45 = vsel %vm283_vm1, %v4500_v40, 0  ;;  %v4511_v50 = vcombine.low %v242_v43, %v242_v43  ;;  %v4514_v56 = vcombine.high %v243_v51, %v243_v51  ;;  %v254_v42 = vld [vmem:[%s6128_s1 + $0x98] sm:$0xff] }
  0x68   :  { %v209_v24 = vrot.slane %v201_v21, %v208_v23  ;;  %v613_v54 = vsel %vm283_vm1, %v4509_v49, 0  ;;  %v4522_v57 = vcombine.high %v244_v52, %v244_v52  ;;  %v4513_v59 = vcombine.low %v243_v51, %v243_v51  ;;  %v255_v49 = vld [vmem:[%s6128_s1 + $0xa0] sm:$0xff] }
  0x69   :  { %v619_v55 = vsel %vm283_vm1, %v4511_v50, 0  ;;  %v4521_v60 = vcombine.low %v244_v52, %v244_v52  ;;  %v4524_v3 = vcombine.high %v245_v62, %v245_v62  ;;  %v4526_v4 = vcombine.high %v246_v63, %v246_v63  ;;  %v256_v50 = vld [vmem:[%s6128_s1 + $0xa8] sm:$0xff] }
  0x6a   :  { %v5847_v25 = vrot.slane %v209_v24, %v208_v23  ;;  %v210_v48 = vcombine.high %v209_v24, %v209_v24  ;;  %v625_v1 = vsel %vm283_vm1, %v4513_v59, 0  ;;  %v4523_v6 = vcombine.low %v245_v62, %v245_v62 }
  0x6b   :  { %v777_v2 = vsel %vm283_vm1, %v4521_v60, 0  ;;  %v4525_v7 = vcombine.low %v246_v63, %v246_v63  ;;  %v4535_v14 = vcombine.high %v247_v9, %v247_v9  ;;  %v4537_v15 = vcombine.high %v248_v11, %v248_v11  ;;  %v257_v60 = vld [vmem:[%s6128_s1 + $0xb0] sm:$0xff] }
  0x6c   :  { %v4483_v29 = vpack.i.b16 %v5847_v25, %v5847_v25  ;;  %v228_v32 = vunpack.i.h.s16 %v5847_v25  ;;  %v5890_v53 = vrot.slane %v210_v48, %v208_v23  ;;  %v783_v12 = vsel %vm283_vm1, %v4523_v6, 0 }
  0x6d   :  { %v789_v13 = vsel %vm283_vm1, %v4525_v7, 0  ;;  %v4534_v16 = vcombine.low %v247_v9, %v247_v9  ;;  %v4536_v17 = vcombine.low %v248_v11, %v248_v11  ;;  %v225_v20 = vcombine.high %v5847_v25, %v5847_v25  ;;  %v1736_v9 = vld [vmem:[#allocation3] sm:$0xff] }
  0x6e   :  { %v263_v33 = vrot.slane %v4483_v29, %v5849_v26  ;;  %v425_v38 = vpack.i.b16 %v228_v32, %v228_v32  ;;  %v4508_v58 = vpack.i.b16 %v5890_v53, %v5890_v53  ;;  %v230_v0 = vunpack.i.h.s16 %v5890_v53 }
  0x6f   :  { %v941_v21 = vsel %vm283_vm1, %v4534_v16, 0  ;;  %v947_v22 = vsel %vm283_vm1, %v4536_v17, 0  ;;  %v4539_v23 = vcombine.high %v249_v18, %v249_v18  ;;  %v4547_v24 = vcombine.high %v250_v19, %v250_v19 }
  0x70   :  { %4491 = vmatmul.mubr.msk.bf16.vlgmr.msra.gmra.mrb[0].mxu0 %vm279_vm2, %v263_v33  ;;  %4493 = vmatmul.mubr.msk.bf16.vlgmr.msra.gmra.mrb[0].mxu1 %vm279_vm2, %v263_v33  ;;  %v429_v41 = vrot.slane %v425_v38, %v5849_v26  ;;  %v593_v61 = vrot.slane %v4508_v58, %v5849_v26  ;;  %v753_v5 = vpack.i.b16 %v230_v0, %v230_v0  ;;  %v232_v32 = vunpack.i.h.s16 %v225_v20 }
  0x71   :  { %385 = vmatpush1.bf16.msra.mxu0 %v297_v34  ;;  %467 = vmatpush1.bf16.msra.mxu1 %v449_v35  ;;  %v4533_v27 = vpack.i.b16 %v225_v20, %v225_v20  ;;  %v4538_v28 = vcombine.low %v249_v18, %v249_v18  ;;  %v4546_v29 = vcombine.low %v250_v19, %v250_v19  ;;  %vm1628_vm3 = vcmask 1041409  }
  0x72   :  { %416 = vmatprep.mubr.bf16.mxu0 %v5703_v10  ;;  %498 = vmatprep.mubr.bf16.mxu1 %v5703_v10  ;;  %v757_v8 = vrot.slane %v753_v5, %v5849_v26  ;;  %v4549_v35 = vcombine.high %v251_v30, %v251_v30  ;;  %v4548_v38 = vcombine.low %v251_v30, %v251_v30  ;;  %vm1631_vm4 = vcmask 1042434  }
  0x73   :  { %4504 = vmatprep.subr.msk.bf16.mxu0 %vm283_vm1, %v4499_v36  ;;  %4506 = vmatprep.subr.msk.bf16.mxu1 %vm283_vm1, %v4501_v37  ;;  %v921_v25 = vrot.slane %v4533_v27, %v5849_v26  ;;  %v1105_v34 = vsel %vm283_vm1, %v4546_v29, 0  ;;  %v4551_v36 = vcombine.high %v252_v31, %v252_v31  ;;  %v1081_v37 = vpack.i.b16 %v232_v32, %v232_v32 }
  0x74   :  { %v4550_v39 = vcombine.low %v252_v31, %v252_v31  ;;  %v1111_v43 = vsel %vm283_vm1, %v4548_v38, 0  ;;  %v4561_v48 = vcombine.low %v254_v42, %v254_v42  ;;  %v226_v51 = vcombine.high %v5890_v53, %v5890_v53 }
  0x75   :  { %v1085_v40 = vrot.slane %v1081_v37, %v5849_v26  ;;  %v4563_v58 = vcombine.low %v255_v49, %v255_v49  ;;  %v4571_v59 = vcombine.low %v256_v50, %v256_v50  ;;  %vm1634_vm5 = vcmask 1043459  }
  0x76   :  { %v234_v62 = vunpack.i.h.s16 %v226_v51  ;;  %vm1637_vm6 = vcmask 1044484   ;;  %vm1640_vm7 = vcmask 1045509   ;;  %vm1643_vm8 = vcmask 1046534  }
  0x77   :  { %v1281_v63 = vsel %vm283_vm1, %v4563_v58, 0  ;;  %v1433_v0 = vsel %vm283_vm1, %v4571_v59, 0  ;;  %vm1646_vm9 = vcmask 1047559  }
  0x78   :  { %4495 = vmatmul.mubr.msk.bf16.vlgmr.msra.gmra.mrb[4].mxu0 %vm279_vm2, %v263_v33  ;;  %4503 = vmatmul.mubr.msk.bf16.vlgmr.msra.gmra.mrb[4].mxu1 %vm279_vm2, %v429_v41  ;;  %v953_v33 = vsel %vm283_vm1, %v4538_v28, 0 }
  0x79   :  { %508 = vmatpush1.bf16.msra.mxu0 %v455_v44  ;;  %549 = vmatpush1.bf16.msra.mxu1 %v461_v45  ;;  %v1117_v44 = vsel %vm283_vm1, %v4550_v39, 0 }
  0x7a   :  { %539 = vmatprep.mubr.bf16.mxu0 %v5703_v10  ;;  %580 = vmatprep.mubr.bf16.mxu1 %v5703_v10 }
  0x7b   :  { %4515 = vmatprep.subr.msk.bf16.mxu0 %vm283_vm1, %v4510_v46  ;;  %4517 = vmatprep.subr.msk.bf16.mxu1 %vm283_vm1, %v4512_v47  ;;  %v4562_v46 = vcombine.high %v254_v42, %v254_v42 }
  0x80   :  { %4505 = vmatmul.mubr.msk.bf16.vlgmr.msra.gmra.mrb[8].mxu0 %vm279_vm2, %v429_v41  ;;  %4507 = vmatmul.mubr.msk.bf16.vlgmr.msra.gmra.mrb[8].mxu1 %vm279_vm2, %v429_v41  ;;  %v253_v41 = vld [vmem:[%s6128_s1 + $0x90] sm:$0xff] }
  0x81   :  { %631 = vmatpush1.bf16.msra.mxu0 %v613_v54  ;;  %672 = vmatpush1.bf16.msra.mxu1 %v619_v55  ;;  %v4560_v45 = vcombine.high %v253_v41, %v253_v41  ;;  %v4559_v47 = vcombine.low %v253_v41, %v253_v41  ;;  %v1275_v54 = vsel %vm283_vm1, %v4561_v48, 0  ;;  %v4564_v55 = vcombine.high %v255_v49, %v255_v49 }
  0x82   :  { %662 = vmatprep.mubr.bf16.mxu0 %v5703_v10  ;;  %703 = vmatprep.mubr.bf16.mxu1 %v5703_v10 }
  0x83   :  { %4519 = vmatprep.subr.msk.bf16.mxu0 %vm283_vm1, %v4514_v56  ;;  %4527 = vmatprep.subr.msk.bf16.mxu1 %vm283_vm1, %v4522_v57  ;;  %v1269_v52 = vsel %vm283_vm1, %v4559_v47, 0  ;;  %v4572_v56 = vcombine.high %v256_v50, %v256_v50  ;;  %v4558_v57 = vpack.i.b16 %v226_v51, %v226_v51 }
  0x85   :  { %v1249_v53 = vrot.slane %v4558_v57, %v5849_v26 }
  0x88   :  { %4516 = vmatmul.mubr.msk.bf16.vlgmr.msra.gmra.mrb[12].mxu0 %vm279_vm2, %v593_v61  ;;  %4518 = vmatmul.mubr.msk.bf16.vlgmr.msra.gmra.mrb[12].mxu1 %vm279_vm2, %v593_v61 }
  0x89   :  { %713 = vmatpush1.bf16.msra.mxu0 %v625_v1  ;;  %795 = vmatpush1.bf16.msra.mxu1 %v777_v2  ;;  %v4574_v1 = vcombine.high %v257_v60, %v257_v60 }
  0x8a   :  { %744 = vmatprep.mubr.bf16.mxu0 %v5703_v10  ;;  %826 = vmatprep.mubr.bf16.mxu1 %v5703_v10 }
  0x8b   :  { %4529 = vmatprep.subr.msk.bf16.mxu0 %vm283_vm1, %v4524_v3  ;;  %4531 = vmatprep.subr.msk.bf16.mxu1 %vm283_vm1, %v4526_v4  ;;  %v1409_v3 = vpack.i.b16 %v234_v62, %v234_v62  ;;  %v4573_v4 = vcombine.low %v257_v60, %v257_v60 }
  0x8d   :  { %v1413_v6 = vrot.slane %v1409_v3, %v5849_v26  ;;  %v1439_v7 = vsel %vm283_vm1, %v4573_v4, 0 }
  0x90   :  { %4520 = vmatmul.mubr.msk.bf16.vlgmr.msra.gmra.mrb[16].mxu0 %vm279_vm2, %v593_v61  ;;  %4528 = vmatmul.mubr.msk.bf16.vlgmr.msra.gmra.mrb[16].mxu1 %vm279_vm2, %v757_v8  ;;  %v258_v61 = vld [vmem:[%s6128_s1 + $0xb8] sm:$0xff] }
  0x91   :  { %836 = vmatpush1.bf16.msra.mxu0 %v783_v12  ;;  %877 = vmatpush1.bf16.msra.mxu1 %v789_v13  ;;  %v4576_v2 = vcombine.high %v258_v61, %v258_v61  ;;  %v4575_v5 = vcombine.low %v258_v61, %v258_v61 }
  0x92   :  { %867 = vmatprep.mubr.bf16.mxu0 %v5703_v10  ;;  %908 = vmatprep.mubr.bf16.mxu1 %v5703_v10 }
  0x93   :  { %4540 = vmatprep.subr.msk.bf16.mxu0 %vm283_vm1, %v4535_v14  ;;  %4542 = vmatprep.subr.msk.bf16.mxu1 %vm283_vm1, %v4537_v15 }
  0x98   :  { %4530 = vmatmul.mubr.msk.bf16.vlgmr.msra.gmra.mrb[20].mxu0 %vm279_vm2, %v757_v8  ;;  %4532 = vmatmul.mubr.msk.bf16.vlgmr.msra.gmra.mrb[20].mxu1 %vm279_vm2, %v757_v8  ;;  %v1445_v8 = vsel %vm283_vm1, %v4575_v5, 0 }
  0x99   :  { %959 = vmatpush1.bf16.msra.mxu0 %v941_v21  ;;  %1000 = vmatpush1.bf16.msra.mxu1 %v947_v22 }
  0x9a   :  { %990 = vmatprep.mubr.bf16.mxu0 %v5703_v10  ;;  %1031 = vmatprep.mubr.bf16.mxu1 %v5703_v10 }
  0x9b   :  { %4544 = vmatprep.subr.msk.bf16.mxu0 %vm283_vm1, %v4539_v23  ;;  %4552 = vmatprep.subr.msk.bf16.mxu1 %vm283_vm1, %v4547_v24 }
  0xa0   :  { %4541 = vmatmul.mubr.msk.bf16.vlgmr.msra.gmra.mrb[24].mxu0 %vm279_vm2, %v921_v25  ;;  %4543 = vmatmul.mubr.msk.bf16.vlgmr.msra.gmra.mrb[24].mxu1 %vm279_vm2, %v921_v25 }
  0xa1   :  { %1041 = vmatpush1.bf16.msra.mxu0 %v953_v33  ;;  %1123 = vmatpush1.bf16.msra.mxu1 %v1105_v34 }
  0xa2   :  { %1072 = vmatprep.mubr.bf16.mxu0 %v5703_v10  ;;  %1154 = vmatprep.mubr.bf16.mxu1 %v5703_v10 }
  0xa3   :  { %4554 = vmatprep.subr.msk.bf16.mxu0 %vm283_vm1, %v4549_v35  ;;  %4556 = vmatprep.subr.msk.bf16.mxu1 %vm283_vm1, %v4551_v36 }
  0xa8   :  { %4545 = vmatmul.mubr.msk.bf16.vlgmr.msra.gmra.mrb[28].mxu0 %vm279_vm2, %v921_v25  ;;  %4553 = vmatmul.mubr.msk.bf16.vlgmr.msra.gmra.mrb[28].mxu1 %vm279_vm2, %v1085_v40 }
  0xa9   :  { %1164 = vmatpush1.bf16.msra.mxu0 %v1111_v43  ;;  %1205 = vmatpush1.bf16.msra.mxu1 %v1117_v44 }
  0xaa   :  { %1195 = vmatprep.mubr.bf16.mxu0 %v5703_v10  ;;  %1236 = vmatprep.mubr.bf16.mxu1 %v5703_v10 }
  0xab   :  { %4565 = vmatprep.subr.msk.bf16.mxu0 %vm283_vm1, %v4560_v45  ;;  %4567 = vmatprep.subr.msk.bf16.mxu1 %vm283_vm1, %v4562_v46 }
  0xb0   :  { %4555 = vmatmul.mubr.msk.bf16.vlgmr.msra.gmra.mrb[32].mxu0 %vm279_vm2, %v1085_v40  ;;  %4557 = vmatmul.mubr.msk.bf16.vlgmr.msra.gmra.mrb[32].mxu1 %vm279_vm2, %v1085_v40 }
  0xb1   :  { %1287 = vmatpush1.bf16.msra.mxu0 %v1269_v52  ;;  %1328 = vmatpush1.bf16.msra.mxu1 %v1275_v54 }
  0xb2   :  { %1318 = vmatprep.mubr.bf16.mxu0 %v5703_v10  ;;  %1359 = vmatprep.mubr.bf16.mxu1 %v5703_v10 }
  0xb3   :  { %4569 = vmatprep.subr.msk.bf16.mxu0 %vm283_vm1, %v4564_v55  ;;  %4577 = vmatprep.subr.msk.bf16.mxu1 %vm283_vm1, %v4572_v56 }
  0xb8   :  { %4566 = vmatmul.mubr.msk.bf16.vlgmr.msra.gmra.mrb[36].mxu0 %vm279_vm2, %v1249_v53  ;;  %4568 = vmatmul.mubr.msk.bf16.vlgmr.msra.gmra.mrb[36].mxu1 %vm279_vm2, %v1249_v53 }
  0xb9   :  { %1369 = vmatpush1.bf16.msra.mxu0 %v1281_v63  ;;  %1451 = vmatpush1.bf16.msra.mxu1 %v1433_v0 }
  0xba   :  { %1400 = vmatprep.mubr.bf16.mxu0 %v5703_v10  ;;  %1482 = vmatprep.mubr.bf16.mxu1 %v5703_v10 }
  0xbb   :  { %4579 = vmatprep.subr.msk.bf16.mxu0 %vm283_vm1, %v4574_v1  ;;  %4581 = vmatprep.subr.msk.bf16.mxu1 %vm283_vm1, %v4576_v2 }
  0xc0   :  { %4570 = vmatmul.mubr.msk.bf16.vlgmr.msra.gmra.mrb[40].mxu0 %vm279_vm2, %v1249_v53  ;;  %4578 = vmatmul.mubr.msk.bf16.vlgmr.msra.gmra.mrb[40].mxu1 %vm279_vm2, %v1413_v6 }
  0xc1   :  { %1492 = vmatpush1.bf16.msra.mxu0 %v1439_v7  ;;  %1533 = vmatpush1.bf16.msra.mxu1 %v1445_v8 }
  0xc2   :  { %1523 = vmatprep.mubr.bf16.mxu0 %v5703_v10  ;;  %1564 = vmatprep.mubr.bf16.mxu1 %v5703_v10 }
  0xc8   :  { %4580 = vmatmul.mubr.msk.bf16.vlgmr.msra.gmra.mrb[44].mxu0 %vm279_vm2, %v1413_v6  ;;  %4582 = vmatmul.mubr.msk.bf16.vlgmr.msra.gmra.mrb[44].mxu1 %vm279_vm2, %v1413_v6 }
  0xf0   :  { %v1739_v26 = vpop.xlane.xlu0 %1738 }
  0xf1   :  { %v1740_v11 = vadd.f32 %v1739_v26, %v1736_v9 }
  0xf3   :  { %1742 = vst.msk [vmem:[#allocation3] sm:$0xff] %vm193_vm0, %v1740_v11 }
 0x143   :  { %v336_v12 = vpop.f32.mrb[0].mxu0  ;;  %v377_v13 = vpop.f32.mrb[0].mxu1 }
 0x144   :  { %v338_v14 = vpop.f32.mrb[1].mxu0  ;;  %v379_v15 = vpop.f32.mrb[1].mxu1 }
 0x145   :  { %v340_v16 = vpop.f32.mrb[2].mxu0  ;;  %v381_v17 = vpop.f32.mrb[2].mxu1 }
 0x146   :  { %v341_v18 = vpop.f32.mrb[3].mxu0  ;;  %v382_v19 = vpop.f32.mrb[3].mxu1 }
 0x14b   :  { %v418_v20 = vpop.f32.mrb[4].mxu0  ;;  %v500_v21 = vpop.f32.mrb[4].mxu1 }
 0x14c   :  { %v1627_v10 = vrot.slane %v500_v21, 7  ;;  %v420_v22 = vpop.f32.mrb[5].mxu0  ;;  %v502_v23 = vpop.f32.mrb[5].mxu1 }
 0x14d   :  { %v1648_v24 = vrot.slane %v502_v23, 7  ;;  %v422_v27 = vpop.f32.mrb[6].mxu0  ;;  %v504_v28 = vpop.f32.mrb[6].mxu1 }
 0x14e   :  { %v1629_v29 = vsel %vm1628_vm3, %v1627_v10, %v336_v12  ;;  %v423_v25 = vpop.f32.mrb[7].mxu0  ;;  %v505_v30 = vpop.f32.mrb[7].mxu1 }
 0x14f   :  { %v1649_v31 = vsel %vm1628_vm3, %v1648_v24, %v338_v14 }
 0x153   :  { %v541_v32 = vpop.f32.mrb[8].mxu0  ;;  %v582_v33 = vpop.f32.mrb[8].mxu1 }
 0x154   :  { %v1662_v34 = vrot.slane %v541_v32, 7  ;;  %v1690_v35 = vrot.slane %v582_v33, 7  ;;  %v543_v36 = vpop.f32.mrb[9].mxu0  ;;  %v584_v37 = vpop.f32.mrb[9].mxu1 }
 0x155   :  { %v1676_v38 = vrot.slane %v543_v36, 7  ;;  %v1704_v39 = vrot.slane %v584_v37, 7  ;;  %v545_v40 = vpop.f32.mrb[10].mxu0  ;;  %v586_v41 = vpop.f32.mrb[10].mxu1 }
 0x156   :  { %v1663_v42 = vsel %vm1628_vm3, %v1662_v34, %v377_v13  ;;  %v1691_v43 = vsel %vm1628_vm3, %v1690_v35, %v418_v20  ;;  %v546_v44 = vpop.f32.mrb[11].mxu0  ;;  %v587_v45 = vpop.f32.mrb[11].mxu1 }
 0x157   :  { %v1677_v46 = vsel %vm1628_vm3, %v1676_v38, %v379_v15  ;;  %v1705_v47 = vsel %vm1628_vm3, %v1704_v39, %v420_v22 }
 0x15b   :  { %v664_v48 = vpop.f32.mrb[12].mxu0  ;;  %v705_v49 = vpop.f32.mrb[12].mxu1 }
 0x15c   :  { %v1630_v50 = vrot.slane %v664_v48, 6  ;;  %v1664_v51 = vrot.slane %v705_v49, 6  ;;  %v666_v52 = vpop.f32.mrb[13].mxu0  ;;  %v707_v54 = vpop.f32.mrb[13].mxu1 }
 0x15d   :  { %v1650_v55 = vrot.slane %v666_v52, 6  ;;  %v1678_v56 = vrot.slane %v707_v54, 6  ;;  %v668_v57 = vpop.f32.mrb[14].mxu0  ;;  %v709_v58 = vpop.f32.mrb[14].mxu1 }
 0x15e   :  { %v1632_v59 = vsel %vm1631_vm4, %v1630_v50, %v1629_v29  ;;  %v1665_v53 = vsel %vm1631_vm4, %v1664_v51, %v1663_v42  ;;  %v669_v60 = vpop.f32.mrb[15].mxu0  ;;  %v710_v61 = vpop.f32.mrb[15].mxu1 }
 0x15f   :  { %v1651_v62 = vsel %vm1631_vm4, %v1650_v55, %v1649_v31  ;;  %v1679_v63 = vsel %vm1631_vm4, %v1678_v56, %v1677_v46 }
 0x163   :  { %v746_v0 = vpop.f32.mrb[16].mxu0  ;;  %v828_v1 = vpop.f32.mrb[16].mxu1 }
 0x164   :  { %v1692_v2 = vrot.slane %v746_v0, 6  ;;  %v1633_v3 = vrot.slane %v828_v1, 5  ;;  %v748_v4 = vpop.f32.mrb[17].mxu0  ;;  %v830_v5 = vpop.f32.mrb[17].mxu1 }
 0x165   :  { %v1706_v6 = vrot.slane %v748_v4, 6  ;;  %v1652_v7 = vrot.slane %v830_v5, 5  ;;  %v750_v8 = vpop.f32.mrb[18].mxu0  ;;  %v832_v9 = vpop.f32.mrb[18].mxu1 }
 0x166   :  { %v1693_v26 = vsel %vm1631_vm4, %v1692_v2, %v1691_v43  ;;  %v1635_v11 = vsel %vm1634_vm5, %v1633_v3, %v1632_v59  ;;  %v751_v12 = vpop.f32.mrb[19].mxu0  ;;  %v833_v13 = vpop.f32.mrb[19].mxu1 }
 0x167   :  { %v1707_v14 = vsel %vm1631_vm4, %v1706_v6, %v1705_v47  ;;  %v1653_v15 = vsel %vm1634_vm5, %v1652_v7, %v1651_v62 }
 0x16b   :  { %v869_v16 = vpop.f32.mrb[20].mxu0  ;;  %v910_v17 = vpop.f32.mrb[20].mxu1 }
 0x16c   :  { %v1666_v18 = vrot.slane %v869_v16, 5  ;;  %v1694_v19 = vrot.slane %v910_v17, 5  ;;  %v871_v20 = vpop.f32.mrb[21].mxu0  ;;  %v912_v21 = vpop.f32.mrb[21].mxu1 }
 0x16d   :  { %v1680_v10 = vrot.slane %v871_v20, 5  ;;  %v1708_v22 = vrot.slane %v912_v21, 5  ;;  %v873_v23 = vpop.f32.mrb[22].mxu0  ;;  %v914_v24 = vpop.f32.mrb[22].mxu1 }
 0x16e   :  { %v1667_v27 = vsel %vm1634_vm5, %v1666_v18, %v1665_v53  ;;  %v1695_v28 = vsel %vm1634_vm5, %v1694_v19, %v1693_v26  ;;  %v874_v29 = vpop.f32.mrb[23].mxu0  ;;  %v915_v25 = vpop.f32.mrb[23].mxu1 }
 0x16f   :  { %v1681_v30 = vsel %vm1634_vm5, %v1680_v10, %v1679_v63  ;;  %v1709_v31 = vsel %vm1634_vm5, %v1708_v22, %v1707_v14 }
 0x173   :  { %v992_v32 = vpop.f32.mrb[24].mxu0  ;;  %v1033_v33 = vpop.f32.mrb[24].mxu1 }
 0x174   :  { %v1636_v34 = vrot.slane %v992_v32, 4  ;;  %v1668_v35 = vrot.slane %v1033_v33, 4  ;;  %v994_v36 = vpop.f32.mrb[25].mxu0  ;;  %v1035_v37 = vpop.f32.mrb[25].mxu1 }
 0x175   :  { %v1654_v38 = vrot.slane %v994_v36, 4  ;;  %v1682_v39 = vrot.slane %v1035_v37, 4  ;;  %v996_v40 = vpop.f32.mrb[26].mxu0  ;;  %v1037_v41 = vpop.f32.mrb[26].mxu1 }
 0x176   :  { %v1638_v42 = vsel %vm1637_vm6, %v1636_v34, %v1635_v11  ;;  %v1669_v43 = vsel %vm1637_vm6, %v1668_v35, %v1667_v27  ;;  %v997_v44 = vpop.f32.mrb[27].mxu0  ;;  %v1038_v45 = vpop.f32.mrb[27].mxu1  ;;  %v1573_v35 = vld [vmem:[#allocation2] sm:$0xff]  ;;  %v1574_v40 = vld [vmem:[#allocation2 + $0x8] sm:$0xff] }
 0x177   :  { %v1655_v46 = vsel %vm1637_vm6, %v1654_v38, %v1653_v15  ;;  %v1683_v47 = vsel %vm1637_vm6, %v1682_v39, %v1681_v30 }
 0x17b   :  { %v1074_v48 = vpop.f32.mrb[28].mxu0  ;;  %v1156_v49 = vpop.f32.mrb[28].mxu1 }
 0x17c   :  { %v1696_v50 = vrot.slane %v1074_v48, 4  ;;  %v1639_v51 = vrot.slane %v1156_v49, 3  ;;  %v1076_v52 = vpop.f32.mrb[29].mxu0  ;;  %v1158_v54 = vpop.f32.mrb[29].mxu1 }
 0x17d   :  { %v1710_v55 = vrot.slane %v1076_v52, 4  ;;  %v1656_v56 = vrot.slane %v1158_v54, 3  ;;  %v1078_v57 = vpop.f32.mrb[30].mxu0  ;;  %v1160_v58 = vpop.f32.mrb[30].mxu1 }
 0x17e   :  { %v1697_v59 = vsel %vm1637_vm6, %v1696_v50, %v1695_v28  ;;  %v1641_v53 = vsel %vm1640_vm7, %v1639_v51, %v1638_v42  ;;  %v1079_v60 = vpop.f32.mrb[31].mxu0  ;;  %v1161_v61 = vpop.f32.mrb[31].mxu1  ;;  %v1577_v57 = vld [vmem:[#allocation2 + $0x20] sm:$0xff] }
 0x17f   :  { %v1711_v62 = vsel %vm1637_vm6, %v1710_v55, %v1709_v31  ;;  %v1657_v63 = vsel %vm1640_vm7, %v1656_v56, %v1655_v46  ;;  %v1575_v55 = vld [vmem:[#allocation2 + $0x10] sm:$0xff]  ;;  %v1576_v60 = vld [vmem:[#allocation2 + $0x18] sm:$0xff] }
 0x183   :  { %v1197_v0 = vpop.f32.mrb[32].mxu0  ;;  %v1238_v1 = vpop.f32.mrb[32].mxu1 }
 0x184   :  { %v1670_v2 = vrot.slane %v1197_v0, 3  ;;  %v1698_v3 = vrot.slane %v1238_v1, 3  ;;  %v1199_v4 = vpop.f32.mrb[33].mxu0  ;;  %v1240_v5 = vpop.f32.mrb[33].mxu1 }
 0x185   :  { %v1684_v6 = vrot.slane %v1199_v4, 3  ;;  %v1712_v7 = vrot.slane %v1240_v5, 3  ;;  %v1201_v8 = vpop.f32.mrb[34].mxu0  ;;  %v1242_v9 = vpop.f32.mrb[34].mxu1 }
 0x186   :  { %v1671_v26 = vsel %vm1640_vm7, %v1670_v2, %v1669_v43  ;;  %v1699_v11 = vsel %vm1640_vm7, %v1698_v3, %v1697_v59  ;;  %v1202_v12 = vpop.f32.mrb[35].mxu0  ;;  %v1243_v13 = vpop.f32.mrb[35].mxu1 }
 0x187   :  { %v1685_v14 = vsel %vm1640_vm7, %v1684_v6, %v1683_v47  ;;  %v1713_v15 = vsel %vm1640_vm7, %v1712_v7, %v1711_v62  ;;  %v1578_v62 = vld [vmem:[#allocation2 + $0x28] sm:$0xff] }
 0x18b   :  { %v1320_v16 = vpop.f32.mrb[36].mxu0  ;;  %v1361_v17 = vpop.f32.mrb[36].mxu1 }
 0x18c   :  { %v1642_v18 = vrot.slane %v1320_v16, 2  ;;  %v1672_v19 = vrot.slane %v1361_v17, 2  ;;  %v1322_v20 = vpop.f32.mrb[37].mxu0  ;;  %v1363_v21 = vpop.f32.mrb[37].mxu1 }
 0x18d   :  { %v1658_v10 = vrot.slane %v1322_v20, 2  ;;  %v1686_v22 = vrot.slane %v1363_v21, 2  ;;  %v1324_v23 = vpop.f32.mrb[38].mxu0  ;;  %v1365_v24 = vpop.f32.mrb[38].mxu1 }
 0x18e   :  { %v1644_v27 = vsel %vm1643_vm8, %v1642_v18, %v1641_v53  ;;  %v1673_v28 = vsel %vm1643_vm8, %v1672_v19, %v1671_v26  ;;  %v1325_v29 = vpop.f32.mrb[39].mxu0  ;;  %v1366_v25 = vpop.f32.mrb[39].mxu1 }
 0x18f   :  { %v1659_v30 = vsel %vm1643_vm8, %v1658_v10, %v1657_v63  ;;  %v1687_v31 = vsel %vm1643_vm8, %v1686_v22, %v1685_v14 }
 0x193   :  { %v1402_v32 = vpop.f32.mrb[40].mxu0  ;;  %v1484_v33 = vpop.f32.mrb[40].mxu1 }
 0x194   :  { %v1700_v34 = vrot.slane %v1402_v32, 2  ;;  %v1645_v36 = vrot.slane %v1484_v33, 1  ;;  %v1404_v37 = vpop.f32.mrb[41].mxu0  ;;  %v1486_v38 = vpop.f32.mrb[41].mxu1 }
 0x195   :  { %v1714_v39 = vrot.slane %v1404_v37, 2  ;;  %v1660_v41 = vrot.slane %v1486_v38, 1  ;;  %v1406_v42 = vpop.f32.mrb[42].mxu0  ;;  %v1488_v43 = vpop.f32.mrb[42].mxu1 }
 0x196   :  { %v1701_v44 = vsel %vm1643_vm8, %v1700_v34, %v1699_v11  ;;  %v1647_v45 = vsel %vm1646_vm9, %v1645_v36, %v1644_v27  ;;  %v1407_v46 = vpop.f32.mrb[43].mxu0  ;;  %v1489_v47 = vpop.f32.mrb[43].mxu1 }
 0x197   :  { %v1724_v48 = vadd.f32 %v1647_v45, %v1573_v35  ;;  %v1715_v49 = vsel %vm1643_vm8, %v1714_v39, %v1713_v15  ;;  %v1661_v50 = vsel %vm1646_vm9, %v1660_v41, %v1659_v30 }
 0x198   :  { %v1725_v51 = vadd.f32 %v1661_v50, %v1574_v40 }
 0x199   :  { %1730 = vst [vmem:[#allocation2] sm:$0xff] %v1724_v48 }
 0x19a   :  { %1731 = vst [vmem:[#allocation2 + $0x8] sm:$0xff] %v1725_v51 }
 0x19b   :  { %v1525_v52 = vpop.f32.mrb[44].mxu0  ;;  %v1566_v54 = vpop.f32.mrb[44].mxu1 }
 0x19c   :  { %v1674_v56 = vrot.slane %v1525_v52, 1  ;;  %v1702_v58 = vrot.slane %v1566_v54, 1  ;;  %v1527_v59 = vpop.f32.mrb[45].mxu0  ;;  %v1568_v53 = vpop.f32.mrb[45].mxu1 }
 0x19d   :  { %v1688_v61 = vrot.slane %v1527_v59, 1  ;;  %v1716_v63 = vrot.slane %v1568_v53, 1  ;;  %v1529_v0 = vpop.f32.mrb[46].mxu0  ;;  %v1570_v1 = vpop.f32.mrb[46].mxu1 }
 0x19e   :  { %v1675_v2 = vsel %vm1646_vm9, %v1674_v56, %v1673_v28  ;;  %v1703_v3 = vsel %vm1646_vm9, %v1702_v58, %v1701_v44  ;;  %v1530_v4 = vpop.f32.mrb[47].mxu0  ;;  %v1571_v5 = vpop.f32.mrb[47].mxu1 }
 0x19f   :  { %v1726_v6 = vadd.f32 %v1675_v2, %v1575_v55  ;;  %v1728_v7 = vadd.f32 %v1703_v3, %v1577_v57  ;;  %v1689_v8 = vsel %vm1646_vm9, %v1688_v61, %v1687_v31  ;;  %v1717_v9 = vsel %vm1646_vm9, %v1716_v63, %v1715_v49 }
 0x1a0   :  { %v1727_v26 = vadd.f32 %v1689_v8, %v1576_v60  ;;  %v1729_v11 = vadd.f32 %v1717_v9, %v1578_v62 }
 0x1a1   :  { %1732 = vst [vmem:[#allocation2 + $0x10] sm:$0xff] %v1726_v6  ;;  %1734 = vst [vmem:[#allocation2 + $0x20] sm:$0xff] %v1728_v7 }
 0x1a2   :  { %1733 = vst [vmem:[#allocation2 + $0x18] sm:$0xff] %v1727_v26  ;;  %1735 = vst [vmem:[#allocation2 + $0x28] sm:$0xff] %v1729_v11 }
 0x1a3 PF:  { %v5705_v13 = vmov 0   ;;  %v5079_v15 = vld [vmem:[#allocation7 + $0x4] ss:$24 sps:$4 sm:$0xff]   ;;  %v5083_v17 = vld [vmem:[#allocation7] ss:$24 sps:$4 sm:$0xff]  }
 0x1a4   :  { %5078 = vset.pattern.permute.xlu0 %v5705_v13  ;;  %v5081_v16 = vld [vmem:[#allocation7 + $0x304] ss:$24 sps:$4 sm:$0xff]   ;;  %v5084_v18 = vld [vmem:[#allocation7 + $0x300] ss:$24 sps:$4 sm:$0xff]   ;;  %3532 = vmatprep.subr.bf16.mxu1 %v5079_v15  ;;  %v5085_v19 = vld [vmem:[#allocation7 + $0x34] ss:$24 sps:$4 sm:$0xff]  }
 0x1a5   :  { %v1746_v12 = vld [vmem:[#allocation3] sm:$0xff]  ;;  %3573 = vmatprep.subr.bf16.mxu0 %v5081_v16  ;;  %3533 = vmatpush1.bf16.msra.mxu1 %v5083_v17  ;;  %v5089_v21 = vld [vmem:[#allocation7 + $0x30] ss:$24 sps:$4 sm:$0xff]   ;;  %v5180_v15 = vld [vmem:[#allocation7 + $0xc] ss:$24 sps:$4 sm:$0xff]  }
 0x1a6   :  { %v1747_v14 = vmax.f32 %v1746_v12, 1.0  ;;  %v5087_v20 = vld [vmem:[#allocation7 + $0x334] ss:$24 sps:$4 sm:$0xff]   ;;  %3574 = vmatpush1.bf16.msra.mxu0 %v5084_v18  ;;  %3534 = vmatprep.subr.bf16.mxu1 %v5085_v19  ;;  %v5090_v10 = vld [vmem:[#allocation7 + $0x330] ss:$24 sps:$4 sm:$0xff]  }
 0x1a7   :  { %3575 = vmatprep.subr.bf16.mxu0 %v5087_v20  ;;  %v5091_v22 = vld [vmem:[#allocation7 + $0x64] ss:$24 sps:$4 sm:$0xff]   ;;  %v5095_v24 = vld [vmem:[#allocation7 + $0x60] ss:$24 sps:$4 sm:$0xff]   ;;  %v5097_v28 = vld [vmem:[#allocation7 + $0x94] ss:$24 sps:$4 sm:$0xff]  }
 0x1a8   :  { %1756 = vperm.xlu0 %5078, %v1747_v14   ;;  %v5093_v23 = vld [vmem:[#allocation7 + $0x364] ss:$24 sps:$4 sm:$0xff]   ;;  %v5096_v27 = vld [vmem:[#allocation7 + $0x360] ss:$24 sps:$4 sm:$0xff]   ;;  %v5099_v29 = vld [vmem:[#allocation7 + $0x394] ss:$24 sps:$4 sm:$0xff]  }
 0x1a9   :  { %3535 = vmatpush1.bf16.msra.mxu1 %v5089_v21  ;;  %v5101_v25 = vld [vmem:[#allocation7 + $0x90] ss:$24 sps:$4 sm:$0xff]   ;;  %v5103_v31 = vld [vmem:[#allocation7 + $0xc4] ss:$24 sps:$4 sm:$0xff]   ;;  %v5107_v33 = vld [vmem:[#allocation7 + $0xc0] ss:$24 sps:$4 sm:$0xff]  }
 0x1aa   :  { %3576 = vmatpush1.bf16.msra.mxu0 %v5090_v10  ;;  %3536 = vmatprep.subr.bf16.mxu1 %v5091_v22  ;;  %v5102_v30 = vld [vmem:[#allocation7 + $0x390] ss:$24 sps:$4 sm:$0xff]   ;;  %v5105_v32 = vld [vmem:[#allocation7 + $0x3c4] ss:$24 sps:$4 sm:$0xff]   ;;  %v5108_v34 = vld [vmem:[#allocation7 + $0x3c0] ss:$24 sps:$4 sm:$0xff]  }
 0x1ab   :  { %3577 = vmatprep.subr.bf16.mxu0 %v5093_v23  ;;  %v5109_v35 = vld [vmem:[#allocation7 + $0xf4] ss:$24 sps:$4 sm:$0xff]   ;;  %v5113_v37 = vld [vmem:[#allocation7 + $0xf0] ss:$24 sps:$4 sm:$0xff]   ;;  %v5115_v39 = vld [vmem:[#allocation7 + $0x124] ss:$24 sps:$4 sm:$0xff]  }
 0x1ac   :  { %v5111_v36 = vld [vmem:[#allocation7 + $0x3f4] ss:$24 sps:$4 sm:$0xff]   ;;  %v5114_v38 = vld [vmem:[#allocation7 + $0x3f0] ss:$24 sps:$4 sm:$0xff]   ;;  %v5117_v40 = vld [vmem:[#allocation7 + $0x424] ss:$24 sps:$4 sm:$0xff]  }
 0x1ad   :  { %3537 = vmatpush1.bf16.msra.mxu1 %v5095_v24  ;;  %v5119_v41 = vld [vmem:[#allocation7 + $0x120] ss:$24 sps:$4 sm:$0xff]   ;;  %v5121_v43 = vld [vmem:[#allocation7 + $0x154] ss:$24 sps:$4 sm:$0xff]   ;;  %v5125_v45 = vld [vmem:[#allocation7 + $0x150] ss:$24 sps:$4 sm:$0xff]  }
 0x1ae   :  { %3578 = vmatpush1.bf16.msra.mxu0 %v5096_v27  ;;  %3538 = vmatprep.subr.bf16.mxu1 %v5097_v28  ;;  %v5120_v42 = vld [vmem:[#allocation7 + $0x420] ss:$24 sps:$4 sm:$0xff]   ;;  %v5123_v44 = vld [vmem:[#allocation7 + $0x454] ss:$24 sps:$4 sm:$0xff]   ;;  %v5126_v46 = vld [vmem:[#allocation7 + $0x450] ss:$24 sps:$4 sm:$0xff]  }
 0x1af   :  { %3579 = vmatprep.subr.bf16.mxu0 %v5099_v29  ;;  %v5127_v47 = vld [vmem:[#allocation7 + $0x184] ss:$24 sps:$4 sm:$0xff]   ;;  %v5131_v49 = vld [vmem:[#allocation7 + $0x180] ss:$24 sps:$4 sm:$0xff]   ;;  %v5133_v51 = vld [vmem:[#allocation7 + $0x1b4] ss:$24 sps:$4 sm:$0xff]  }
 0x1b0   :  { %v5129_v48 = vld [vmem:[#allocation7 + $0x484] ss:$24 sps:$4 sm:$0xff]   ;;  %v5132_v50 = vld [vmem:[#allocation7 + $0x480] ss:$24 sps:$4 sm:$0xff]   ;;  %v5135_v52 = vld [vmem:[#allocation7 + $0x4b4] ss:$24 sps:$4 sm:$0xff]  }
 0x1b1   :  { %3539 = vmatpush1.bf16.msra.mxu1 %v5101_v25  ;;  %v5137_v54 = vld [vmem:[#allocation7 + $0x1b0] ss:$24 sps:$4 sm:$0xff]   ;;  %v5139_v56 = vld [vmem:[#allocation7 + $0x1e4] ss:$24 sps:$4 sm:$0xff]   ;;  %v5143_v58 = vld [vmem:[#allocation7 + $0x1e0] ss:$24 sps:$4 sm:$0xff]  }
 0x1b2   :  { %3580 = vmatpush1.bf16.msra.mxu0 %v5102_v30  ;;  %3540 = vmatprep.subr.bf16.mxu1 %v5103_v31  ;;  %v5138_v55 = vld [vmem:[#allocation7 + $0x4b0] ss:$24 sps:$4 sm:$0xff]   ;;  %v5141_v57 = vld [vmem:[#allocation7 + $0x4e4] ss:$24 sps:$4 sm:$0xff]   ;;  %v5144_v59 = vld [vmem:[#allocation7 + $0x4e0] ss:$24 sps:$4 sm:$0xff]  }
 0x1b3   :  { %3581 = vmatprep.subr.bf16.mxu0 %v5105_v32  ;;  %v5145_v53 = vld [vmem:[#allocation7 + $0x214] ss:$24 sps:$4 sm:$0xff]   ;;  %v5149_v61 = vld [vmem:[#allocation7 + $0x210] ss:$24 sps:$4 sm:$0xff]   ;;  %v5151_v63 = vld [vmem:[#allocation7 + $0x244] ss:$24 sps:$4 sm:$0xff]  }
 0x1b4   :  { %v5147_v60 = vld [vmem:[#allocation7 + $0x514] ss:$24 sps:$4 sm:$0xff]   ;;  %v5150_v62 = vld [vmem:[#allocation7 + $0x510] ss:$24 sps:$4 sm:$0xff]   ;;  %v5153_v0 = vld [vmem:[#allocation7 + $0x544] ss:$24 sps:$4 sm:$0xff]  }
 0x1b5   :  { %3541 = vmatpush1.bf16.msra.mxu1 %v5107_v33  ;;  %v5155_v1 = vld [vmem:[#allocation7 + $0x240] ss:$24 sps:$4 sm:$0xff]   ;;  %v5157_v3 = vld [vmem:[#allocation7 + $0x274] ss:$24 sps:$4 sm:$0xff]   ;;  %v5161_v5 = vld [vmem:[#allocation7 + $0x270] ss:$24 sps:$4 sm:$0xff]  }
 0x1b6   :  { %3582 = vmatpush1.bf16.msra.mxu0 %v5108_v34  ;;  %3542 = vmatprep.subr.bf16.mxu1 %v5109_v35  ;;  %v5156_v2 = vld [vmem:[#allocation7 + $0x540] ss:$24 sps:$4 sm:$0xff]   ;;  %v5159_v4 = vld [vmem:[#allocation7 + $0x574] ss:$24 sps:$4 sm:$0xff]   ;;  %v5162_v6 = vld [vmem:[#allocation7 + $0x570] ss:$24 sps:$4 sm:$0xff]  }
 0x1b7   :  { %3583 = vmatprep.subr.bf16.mxu0 %v5111_v36  ;;  %v5163_v7 = vld [vmem:[#allocation7 + $0x2a4] ss:$24 sps:$4 sm:$0xff]   ;;  %v5167_v9 = vld [vmem:[#allocation7 + $0x2a0] ss:$24 sps:$4 sm:$0xff]   ;;  %v5169_v11 = vld [vmem:[#allocation7 + $0x2d4] ss:$24 sps:$4 sm:$0xff]  }
 0x1b8   :  { %v5165_v8 = vld [vmem:[#allocation7 + $0x5a4] ss:$24 sps:$4 sm:$0xff]   ;;  %v5168_v26 = vld [vmem:[#allocation7 + $0x5a0] ss:$24 sps:$4 sm:$0xff]   ;;  %v5171_v12 = vld [vmem:[#allocation7 + $0x5d4] ss:$24 sps:$4 sm:$0xff]  }
 0x1b9   :  { %3543 = vmatpush1.bf16.msra.mxu1 %v5113_v37  ;;  %v5173_v13 = vld [vmem:[#allocation7 + $0x2d0] ss:$24 sps:$4 sm:$0xff]   ;;  %v5177_v16 = vld [vmem:[#allocation7 + $0x604] ss:$24 sps:$4 sm:$0xff]   ;;  %v5175_v27 = vld [vmem:[#allocation7 + $0x600] ss:$24 sps:$4 sm:$0xff]  }
 0x1ba   :  { %3584 = vmatpush1.bf16.msra.mxu0 %v5114_v38  ;;  %3544 = vmatprep.subr.bf16.mxu1 %v5115_v39  ;;  %v5174_v14 = vld [vmem:[#allocation7 + $0x5d0] ss:$24 sps:$4 sm:$0xff]   ;;  %v1751_v19 = vld [vmem:[#allocation2 + $0x18] sm:$0xff]  ;;  %v1750_v21 = vld [vmem:[#allocation2 + $0x10] sm:$0xff] }
 0x1bb   :  { %3585 = vmatprep.subr.bf16.mxu0 %v5117_v40  ;;  %v1749_v18 = vld [vmem:[#allocation2 + $0x8] sm:$0xff]  ;;  %v1748_v20 = vld [vmem:[#allocation2] sm:$0xff] }
 0x1bc   :  { %v1753_v10 = vld [vmem:[#allocation2 + $0x28] sm:$0xff]  ;;  %v5178_v28 = vld [vmem:[#allocation7 + $0x8] ss:$24 sps:$4 sm:$0xff]   ;;  %v5189_v40 = vld [vmem:[#allocation7 + $0x664] ss:$24 sps:$4 sm:$0xff]  }
 0x1bd   :  { %3545 = vmatpush1.bf16.msra.mxu1 %v5119_v41  ;;  %v5183_v35 = vld [vmem:[#allocation7 + $0x634] ss:$24 sps:$4 sm:$0xff]   ;;  %v5181_v36 = vld [vmem:[#allocation7 + $0x630] ss:$24 sps:$4 sm:$0xff]  }
 0x1be   :  { %3586 = vmatpush1.bf16.msra.mxu0 %v5120_v42  ;;  %3546 = vmatprep.subr.bf16.mxu1 %v5121_v43  ;;  %v5184_v37 = vld [vmem:[#allocation7 + $0x38] ss:$24 sps:$4 sm:$0xff]   ;;  %v5186_v38 = vld [vmem:[#allocation7 + $0x3c] ss:$24 sps:$4 sm:$0xff]   ;;  %v5192_v41 = vld [vmem:[#allocation7 + $0x6c] ss:$24 sps:$4 sm:$0xff]  }
 0x1bf   :  { %3587 = vmatprep.subr.bf16.mxu0 %v5123_v44  ;;  %v5187_v42 = vld [vmem:[#allocation7 + $0x660] ss:$24 sps:$4 sm:$0xff]   ;;  %v5195_v44 = vld [vmem:[#allocation7 + $0x694] ss:$24 sps:$4 sm:$0xff]  }
 0x1c0   :  { %v5190_v43 = vld [vmem:[#allocation7 + $0x68] ss:$24 sps:$4 sm:$0xff]  }
 0x1c1   :  { %3547 = vmatpush1.bf16.msra.mxu1 %v5125_v45  ;;  %v5198_v45 = vld [vmem:[#allocation7 + $0x9c] ss:$24 sps:$4 sm:$0xff]  }
 0x1c2   :  { %3588 = vmatpush1.bf16.msra.mxu0 %v5126_v46  ;;  %3548 = vmatprep.subr.bf16.mxu1 %v5127_v47  ;;  %v5193_v46 = vld [vmem:[#allocation7 + $0x690] ss:$24 sps:$4 sm:$0xff]  }
 0x1c3   :  { %3589 = vmatprep.subr.bf16.mxu0 %v5129_v48  ;;  %v5196_v47 = vld [vmem:[#allocation7 + $0x98] ss:$24 sps:$4 sm:$0xff]   ;;  %v5201_v48 = vld [vmem:[#allocation7 + $0x6c4] ss:$24 sps:$4 sm:$0xff]  }
 0x1c5   :  { %3549 = vmatpush1.bf16.msra.mxu1 %v5131_v49  ;;  %v5204_v49 = vld [vmem:[#allocation7 + $0xcc] ss:$24 sps:$4 sm:$0xff]  }
 0x1c6   :  { %3590 = vmatpush1.bf16.msra.mxu0 %v5132_v50  ;;  %3550 = vmatprep.subr.bf16.mxu1 %v5133_v51  ;;  %v5199_v50 = vld [vmem:[#allocation7 + $0x6c0] ss:$24 sps:$4 sm:$0xff]  }
 0x1c7   :  { %3591 = vmatprep.subr.bf16.mxu0 %v5135_v52  ;;  %v5202_v51 = vld [vmem:[#allocation7 + $0xc8] ss:$24 sps:$4 sm:$0xff]   ;;  %v5207_v52 = vld [vmem:[#allocation7 + $0x6f4] ss:$24 sps:$4 sm:$0xff]  }
 0x1c9   :  { %3551 = vmatpush1.bf16.msra.mxu1 %v5137_v54  ;;  %v5210_v54 = vld [vmem:[#allocation7 + $0xfc] ss:$24 sps:$4 sm:$0xff]  }
 0x1ca   :  { %3592 = vmatpush1.bf16.msra.mxu0 %v5138_v55  ;;  %3552 = vmatprep.subr.bf16.mxu1 %v5139_v56  ;;  %v5205_v55 = vld [vmem:[#allocation7 + $0x6f0] ss:$24 sps:$4 sm:$0xff]  }
 0x1cb   :  { %3593 = vmatprep.subr.bf16.mxu0 %v5141_v57  ;;  %v5208_v56 = vld [vmem:[#allocation7 + $0xf8] ss:$24 sps:$4 sm:$0xff]   ;;  %v5213_v57 = vld [vmem:[#allocation7 + $0x724] ss:$24 sps:$4 sm:$0xff]  }
 0x1cd   :  { %3553 = vmatpush1.bf16.msra.mxu1 %v5143_v58  ;;  %v5216_v58 = vld [vmem:[#allocation7 + $0x12c] ss:$24 sps:$4 sm:$0xff]  }
 0x1ce   :  { %3594 = vmatpush1.bf16.msra.mxu0 %v5144_v59  ;;  %3554 = vmatprep.subr.bf16.mxu1 %v5145_v53  ;;  %v5211_v59 = vld [vmem:[#allocation7 + $0x720] ss:$24 sps:$4 sm:$0xff]  }
 0x1cf   :  { %3595 = vmatprep.subr.bf16.mxu0 %v5147_v60  ;;  %v5214_v53 = vld [vmem:[#allocation7 + $0x128] ss:$24 sps:$4 sm:$0xff]   ;;  %v5219_v60 = vld [vmem:[#allocation7 + $0x754] ss:$24 sps:$4 sm:$0xff]  }
 0x1d1   :  { %3555 = vmatpush1.bf16.msra.mxu1 %v5149_v61  ;;  %v5222_v61 = vld [vmem:[#allocation7 + $0x15c] ss:$24 sps:$4 sm:$0xff]  }
 0x1d2   :  { %3596 = vmatpush1.bf16.msra.mxu0 %v5150_v62  ;;  %3556 = vmatprep.subr.bf16.mxu1 %v5151_v63  ;;  %v5217_v62 = vld [vmem:[#allocation7 + $0x750] ss:$24 sps:$4 sm:$0xff]  }
 0x1d3   :  { %3597 = vmatprep.subr.bf16.mxu0 %v5153_v0  ;;  %v5220_v63 = vld [vmem:[#allocation7 + $0x158] ss:$24 sps:$4 sm:$0xff]   ;;  %v5225_v0 = vld [vmem:[#allocation7 + $0x784] ss:$24 sps:$4 sm:$0xff]  }
 0x1d5   :  { %3557 = vmatpush1.bf16.msra.mxu1 %v5155_v1  ;;  %v5228_v1 = vld [vmem:[#allocation7 + $0x18c] ss:$24 sps:$4 sm:$0xff]  }
 0x1d6   :  { %3598 = vmatpush1.bf16.msra.mxu0 %v5156_v2  ;;  %3558 = vmatprep.subr.bf16.mxu1 %v5157_v3  ;;  %v5223_v2 = vld [vmem:[#allocation7 + $0x780] ss:$24 sps:$4 sm:$0xff]  }
 0x1d7   :  { %3599 = vmatprep.subr.bf16.mxu0 %v5159_v4  ;;  %v5226_v3 = vld [vmem:[#allocation7 + $0x188] ss:$24 sps:$4 sm:$0xff]   ;;  %v5231_v4 = vld [vmem:[#allocation7 + $0x7b4] ss:$24 sps:$4 sm:$0xff]  }
 0x1d9   :  { %3559 = vmatpush1.bf16.msra.mxu1 %v5161_v5  ;;  %v5234_v5 = vld [vmem:[#allocation7 + $0x1bc] ss:$24 sps:$4 sm:$0xff]  }
 0x1da   :  { %3600 = vmatpush1.bf16.msra.mxu0 %v5162_v6  ;;  %3560 = vmatprep.subr.bf16.mxu1 %v5163_v7  ;;  %v5229_v6 = vld [vmem:[#allocation7 + $0x7b0] ss:$24 sps:$4 sm:$0xff]  }
 0x1db   :  { %3601 = vmatprep.subr.bf16.mxu0 %v5165_v8  ;;  %v5232_v7 = vld [vmem:[#allocation7 + $0x1b8] ss:$24 sps:$4 sm:$0xff]   ;;  %v5237_v8 = vld [vmem:[#allocation7 + $0x7e4] ss:$24 sps:$4 sm:$0xff]  }
 0x1dd   :  { %3561 = vmatpush1.bf16.msra.mxu1 %v5167_v9  ;;  %v5240_v9 = vld [vmem:[#allocation7 + $0x1ec] ss:$24 sps:$4 sm:$0xff]  }
 0x1de   :  { %3602 = vmatpush1.bf16.msra.mxu0 %v5168_v26  ;;  %3562 = vmatprep.subr.bf16.mxu1 %v5169_v11  ;;  %v5235_v26 = vld [vmem:[#allocation7 + $0x7e0] ss:$24 sps:$4 sm:$0xff]  }
 0x1df   :  { %3603 = vmatprep.subr.bf16.mxu0 %v5171_v12  ;;  %v5238_v11 = vld [vmem:[#allocation7 + $0x1e8] ss:$24 sps:$4 sm:$0xff]   ;;  %v5243_v12 = vld [vmem:[#allocation7 + $0x814] ss:$24 sps:$4 sm:$0xff]  }
 0x1e1   :  { %3563 = vmatpush1.bf16.msra.mxu1 %v5173_v13  ;;  %v5246_v13 = vld [vmem:[#allocation7 + $0x21c] ss:$24 sps:$4 sm:$0xff]  }
 0x1e2   :  { %3604 = vmatpush1.bf16.msra.mxu0 %v5174_v14  ;;  %3655 = vmatprep.subr.bf16.mxu1 %v5180_v15  ;;  %v5241_v14 = vld [vmem:[#allocation7 + $0x810] ss:$24 sps:$4 sm:$0xff]  }
 0x1e3   :  { %3614 = vmatprep.subr.bf16.mxu0 %v5177_v16  ;;  %v5244_v15 = vld [vmem:[#allocation7 + $0x218] ss:$24 sps:$4 sm:$0xff]   ;;  %v5249_v16 = vld [vmem:[#allocation7 + $0x844] ss:$24 sps:$4 sm:$0xff]  }
 0x227   :  { %v1757_v17 = vpop.permute.xlu0 %1756 }
 0x228   :  { %5559 = vrcp.f32 %v1757_v17  ;;  %v5252_v17 = vld [vmem:[#allocation7 + $0x24c] ss:$24 sps:$4 sm:$0xff]  }
 0x232   :  { %v6062_v22 = vpop.eup %5559 }
 0x233   :  { %v1761_v23 = vmul.f32 %v6062_v22, %v1749_v18  ;;  %v1763_v24 = vmul.f32 %v6062_v22, %v1751_v19  ;;  %v1760_v29 = vmul.f32 %v6062_v22, %v1748_v20  ;;  %v1762_v25 = vmul.f32 %v6062_v22, %v1750_v21  ;;  %v5247_v18 = vld [vmem:[#allocation7 + $0x840] ss:$24 sps:$4 sm:$0xff]   ;;  %v5255_v20 = vld [vmem:[#allocation7 + $0x874] ss:$24 sps:$4 sm:$0xff]  }
 0x234   :  { %v1765_v30 = vmul.f32 %v6062_v22, %v1753_v10  ;;  %v5250_v19 = vld [vmem:[#allocation7 + $0x248] ss:$24 sps:$4 sm:$0xff]   ;;  %v5258_v21 = vld [vmem:[#allocation7 + $0x27c] ss:$24 sps:$4 sm:$0xff]  }
 0x235   :  { %v6069_v31 = vpack.c.bf16 %v1761_v23, %v1761_v23  ;;  %v6071_v32 = vpack.c.bf16 %v1763_v24, %v1763_v24  ;;  %v6073_v33 = vpack.c.bf16 %v1760_v29, %v1760_v29  ;;  %v6075_v34 = vpack.c.bf16 %v1762_v25, %v1762_v25  ;;  %v5253_v10 = vld [vmem:[#allocation7 + $0x870] ss:$24 sps:$4 sm:$0xff]   ;;  %v5261_v24 = vld [vmem:[#allocation7 + $0x8a4] ss:$24 sps:$4 sm:$0xff]   ;;  %v5267_v25 = vld [vmem:[#allocation7 + $0x8d4] ss:$24 sps:$4 sm:$0xff]  }
 0x236   :  { %v6081_v39 = vpack.c.bf16 %v1765_v30, %v1765_v30  ;;  %v5256_v23 = vld [vmem:[#allocation7 + $0x278] ss:$24 sps:$4 sm:$0xff]   ;;  %v5262_v29 = vld [vmem:[#allocation7 + $0x2a8] ss:$24 sps:$4 sm:$0xff]   ;;  %v5270_v30 = vld [vmem:[#allocation7 + $0x2dc] ss:$24 sps:$4 sm:$0xff]  }
 0x237   :  { %3564 = vmatprep.mubr.bf16.mxu1 %v6069_v31  ;;  %3605 = vmatprep.mubr.bf16.mxu0 %v6071_v32 }
 0x238   :  { %3565 = vmatmul.mubr.bf16.vlgmr.msra.gmra.mrb[0].mxu1 %v6073_v33  ;;  %3606 = vmatmul.mubr.bf16.vlgmr.msra.gmra.mrb[0].mxu0 %v6075_v34 }
 0x239   :  { %3615 = vmatpush1.bf16.msra.mxu0 %v5175_v27  ;;  %3656 = vmatpush1.bf16.msra.mxu1 %v5178_v28  ;;  %v5264_v27 = vld [vmem:[#allocation7 + $0x2ac] ss:$24 sps:$4 sm:$0xff]   ;;  %v5259_v28 = vld [vmem:[#allocation7 + $0x8a0] ss:$24 sps:$4 sm:$0xff]  }
 0x23a   :  { %3646 = vmatprep.mubr.bf16.mxu0 %v6081_v39  ;;  %3687 = vmatprep.mubr.bf16.mxu1 %v6069_v31 }
 0x23b   :  { %3616 = vmatprep.subr.bf16.mxu0 %v5183_v35  ;;  %3657 = vmatprep.subr.bf16.mxu1 %v5186_v38  ;;  %v5265_v35 = vld [vmem:[#allocation7 + $0x8d0] ss:$24 sps:$4 sm:$0xff]  }
 0x23d   :  { %3617 = vmatpush1.bf16.msra.mxu0 %v5181_v36  ;;  %3658 = vmatpush1.bf16.msra.mxu1 %v5184_v37  ;;  %v5268_v36 = vld [vmem:[#allocation7 + $0x2d8] ss:$24 sps:$4 sm:$0xff]   ;;  %v1752_v37 = vld [vmem:[#allocation2 + $0x20] sm:$0xff] }
 0x23e   :  { %3618 = vmatprep.subr.bf16.mxu0 %v5189_v40  ;;  %3659 = vmatprep.subr.bf16.mxu1 %v5192_v41  ;;  %v1764_v38 = vmul.f32 %v6062_v22, %v1752_v37  ;;  %v5273_v40 = vld [vmem:[#allocation7 + $0x30c] ss:$24 sps:$4 sm:$0xff]   ;;  %v5280_v22 = vld [vmem:[#allocation7 + $0x40] ss:$24 sps:$4 sm:$0xff]  }
 0x23f   :  { %v5276_v41 = vld [vmem:[#allocation7 + $0x14] ss:$24 sps:$4 sm:$0xff]  }
 0x240   :  { %v5360_v37 = vld [vmem:[#allocation7 + $0x2b4] ss:$24 sps:$4 sm:$0xff]  }
 0x241   :  { %3619 = vmatpush1.bf16.msra.mxu0 %v5187_v42  ;;  %3660 = vmatpush1.bf16.msra.mxu1 %v5190_v43  ;;  %v5271_v42 = vld [vmem:[#allocation7 + $0x308] ss:$24 sps:$4 sm:$0xff]  }
 0x242   :  { %3620 = vmatprep.subr.bf16.mxu0 %v5195_v44  ;;  %3661 = vmatprep.subr.bf16.mxu1 %v5198_v45  ;;  %v5274_v43 = vld [vmem:[#allocation7 + $0x10] ss:$24 sps:$4 sm:$0xff]   ;;  %v5279_v44 = vld [vmem:[#allocation7 + $0x33c] ss:$24 sps:$4 sm:$0xff]  }
 0x243   :  { %v5282_v45 = vld [vmem:[#allocation7 + $0x44] ss:$24 sps:$4 sm:$0xff]  }
 0x245   :  { %3621 = vmatpush1.bf16.msra.mxu0 %v5193_v46  ;;  %3662 = vmatpush1.bf16.msra.mxu1 %v5196_v47  ;;  %v6086_v46 = vpack.c.bf16 %v1764_v38, %v1764_v38  ;;  %v5277_v47 = vld [vmem:[#allocation7 + $0x338] ss:$24 sps:$4 sm:$0xff]   ;;  %v5355_v38 = vld [vmem:[#allocation7 + $0x5a8] ss:$24 sps:$4 sm:$0xff]  }
 0x246   :  { %3622 = vmatprep.subr.bf16.mxu0 %v5201_v48  ;;  %3663 = vmatprep.subr.bf16.mxu1 %v5204_v49  ;;  %v5285_v48 = vld [vmem:[#allocation7 + $0x36c] ss:$24 sps:$4 sm:$0xff]  }
 0x247   :  { %v5288_v49 = vld [vmem:[#allocation7 + $0x74] ss:$24 sps:$4 sm:$0xff]  }
 0x249   :  { %3623 = vmatpush1.bf16.msra.mxu0 %v5199_v50  ;;  %3664 = vmatpush1.bf16.msra.mxu1 %v5202_v51  ;;  %v5283_v50 = vld [vmem:[#allocation7 + $0x368] ss:$24 sps:$4 sm:$0xff]  }
 0x24a   :  { %3624 = vmatprep.subr.bf16.mxu0 %v5207_v52  ;;  %3665 = vmatprep.subr.bf16.mxu1 %v5210_v54  ;;  %v5286_v51 = vld [vmem:[#allocation7 + $0x70] ss:$24 sps:$4 sm:$0xff]   ;;  %v5291_v52 = vld [vmem:[#allocation7 + $0x39c] ss:$24 sps:$4 sm:$0xff]  }
 0x24b   :  { %v5294_v54 = vld [vmem:[#allocation7 + $0xa4] ss:$24 sps:$4 sm:$0xff]  }
 0x24d   :  { %3625 = vmatpush1.bf16.msra.mxu0 %v5205_v55  ;;  %3666 = vmatpush1.bf16.msra.mxu1 %v5208_v56  ;;  %v5289_v55 = vld [vmem:[#allocation7 + $0x398] ss:$24 sps:$4 sm:$0xff]  }
 0x24e   :  { %3626 = vmatprep.subr.bf16.mxu0 %v5213_v57  ;;  %3667 = vmatprep.subr.bf16.mxu1 %v5216_v58  ;;  %v5292_v56 = vld [vmem:[#allocation7 + $0xa0] ss:$24 sps:$4 sm:$0xff]   ;;  %v5297_v57 = vld [vmem:[#allocation7 + $0x3cc] ss:$24 sps:$4 sm:$0xff]  }
 0x24f   :  { %v5295_v58 = vld [vmem:[#allocation7 + $0x3c8] ss:$24 sps:$4 sm:$0xff]  }
 0x251   :  { %3627 = vmatpush1.bf16.msra.mxu0 %v5211_v59  ;;  %3668 = vmatpush1.bf16.msra.mxu1 %v5214_v53  ;;  %v5298_v59 = vld [vmem:[#allocation7 + $0xd0] ss:$24 sps:$4 sm:$0xff]   ;;  %v5303_v53 = vld [vmem:[#allocation7 + $0x3fc] ss:$24 sps:$4 sm:$0xff]  }
 0x252   :  { %3628 = vmatprep.subr.bf16.mxu0 %v5219_v60  ;;  %3669 = vmatprep.subr.bf16.mxu1 %v5222_v61  ;;  %v5306_v60 = vld [vmem:[#allocation7 + $0x104] ss:$24 sps:$4 sm:$0xff]   ;;  %v5301_v61 = vld [vmem:[#allocation7 + $0x3f8] ss:$24 sps:$4 sm:$0xff]  }
 0x255   :  { %3629 = vmatpush1.bf16.msra.mxu0 %v5217_v62  ;;  %3670 = vmatpush1.bf16.msra.mxu1 %v5220_v63  ;;  %v5304_v62 = vld [vmem:[#allocation7 + $0x100] ss:$24 sps:$4 sm:$0xff]   ;;  %v5309_v63 = vld [vmem:[#allocation7 + $0x42c] ss:$24 sps:$4 sm:$0xff]  }
 0x256   :  { %3630 = vmatprep.subr.bf16.mxu0 %v5225_v0  ;;  %3671 = vmatprep.subr.bf16.mxu1 %v5228_v1  ;;  %v5312_v0 = vld [vmem:[#allocation7 + $0x134] ss:$24 sps:$4 sm:$0xff]   ;;  %v5307_v1 = vld [vmem:[#allocation7 + $0x428] ss:$24 sps:$4 sm:$0xff]  }
 0x259   :  { %3631 = vmatpush1.bf16.msra.mxu0 %v5223_v2  ;;  %3672 = vmatpush1.bf16.msra.mxu1 %v5226_v3  ;;  %v5310_v2 = vld [vmem:[#allocation7 + $0x130] ss:$24 sps:$4 sm:$0xff]   ;;  %v5315_v3 = vld [vmem:[#allocation7 + $0x45c] ss:$24 sps:$4 sm:$0xff]  }
 0x25a   :  { %3632 = vmatprep.subr.bf16.mxu0 %v5231_v4  ;;  %3673 = vmatprep.subr.bf16.mxu1 %v5234_v5  ;;  %v5318_v4 = vld [vmem:[#allocation7 + $0x164] ss:$24 sps:$4 sm:$0xff]   ;;  %v5313_v5 = vld [vmem:[#allocation7 + $0x458] ss:$24 sps:$4 sm:$0xff]  }
 0x25d   :  { %3633 = vmatpush1.bf16.msra.mxu0 %v5229_v6  ;;  %3674 = vmatpush1.bf16.msra.mxu1 %v5232_v7  ;;  %v5316_v6 = vld [vmem:[#allocation7 + $0x160] ss:$24 sps:$4 sm:$0xff]   ;;  %v5321_v7 = vld [vmem:[#allocation7 + $0x48c] ss:$24 sps:$4 sm:$0xff]  }
 0x25e   :  { %3634 = vmatprep.subr.bf16.mxu0 %v5237_v8  ;;  %3675 = vmatprep.subr.bf16.mxu1 %v5240_v9  ;;  %v5324_v8 = vld [vmem:[#allocation7 + $0x194] ss:$24 sps:$4 sm:$0xff]   ;;  %v5319_v9 = vld [vmem:[#allocation7 + $0x488] ss:$24 sps:$4 sm:$0xff]  }
 0x261   :  { %3635 = vmatpush1.bf16.msra.mxu0 %v5235_v26  ;;  %3676 = vmatpush1.bf16.msra.mxu1 %v5238_v11  ;;  %v5322_v26 = vld [vmem:[#allocation7 + $0x190] ss:$24 sps:$4 sm:$0xff]   ;;  %v5327_v11 = vld [vmem:[#allocation7 + $0x4bc] ss:$24 sps:$4 sm:$0xff]  }
 0x262   :  { %3636 = vmatprep.subr.bf16.mxu0 %v5243_v12  ;;  %3677 = vmatprep.subr.bf16.mxu1 %v5246_v13  ;;  %v5330_v12 = vld [vmem:[#allocation7 + $0x1c4] ss:$24 sps:$4 sm:$0xff]   ;;  %v5325_v13 = vld [vmem:[#allocation7 + $0x4b8] ss:$24 sps:$4 sm:$0xff]  }
 0x265   :  { %3637 = vmatpush1.bf16.msra.mxu0 %v5241_v14  ;;  %3678 = vmatpush1.bf16.msra.mxu1 %v5244_v15  ;;  %v5328_v14 = vld [vmem:[#allocation7 + $0x1c0] ss:$24 sps:$4 sm:$0xff]   ;;  %v5333_v15 = vld [vmem:[#allocation7 + $0x4ec] ss:$24 sps:$4 sm:$0xff]  }
 0x266   :  { %3638 = vmatprep.subr.bf16.mxu0 %v5249_v16  ;;  %3679 = vmatprep.subr.bf16.mxu1 %v5252_v17  ;;  %v5336_v16 = vld [vmem:[#allocation7 + $0x1f4] ss:$24 sps:$4 sm:$0xff]   ;;  %v5331_v17 = vld [vmem:[#allocation7 + $0x4e8] ss:$24 sps:$4 sm:$0xff]  }
 0x269   :  { %3639 = vmatpush1.bf16.msra.mxu0 %v5247_v18  ;;  %3680 = vmatpush1.bf16.msra.mxu1 %v5250_v19  ;;  %v5334_v18 = vld [vmem:[#allocation7 + $0x1f0] ss:$24 sps:$4 sm:$0xff]   ;;  %v5339_v19 = vld [vmem:[#allocation7 + $0x51c] ss:$24 sps:$4 sm:$0xff]  }
 0x26a   :  { %3640 = vmatprep.subr.bf16.mxu0 %v5255_v20  ;;  %3681 = vmatprep.subr.bf16.mxu1 %v5258_v21  ;;  %v5342_v20 = vld [vmem:[#allocation7 + $0x224] ss:$24 sps:$4 sm:$0xff]   ;;  %v5337_v21 = vld [vmem:[#allocation7 + $0x518] ss:$24 sps:$4 sm:$0xff]  }
 0x26d   :  { %3641 = vmatpush1.bf16.msra.mxu0 %v5253_v10  ;;  %3682 = vmatpush1.bf16.msra.mxu1 %v5256_v23  ;;  %v5340_v10 = vld [vmem:[#allocation7 + $0x220] ss:$24 sps:$4 sm:$0xff]   ;;  %v5345_v23 = vld [vmem:[#allocation7 + $0x54c] ss:$24 sps:$4 sm:$0xff]  }
 0x26e   :  { %3642 = vmatprep.subr.bf16.mxu0 %v5261_v24  ;;  %3683 = vmatprep.subr.bf16.mxu1 %v5264_v27  ;;  %v5348_v24 = vld [vmem:[#allocation7 + $0x254] ss:$24 sps:$4 sm:$0xff]   ;;  %v5343_v27 = vld [vmem:[#allocation7 + $0x548] ss:$24 sps:$4 sm:$0xff]  }
 0x271   :  { %3643 = vmatpush1.bf16.msra.mxu0 %v5259_v28  ;;  %3684 = vmatpush1.bf16.msra.mxu1 %v5262_v29  ;;  %v5346_v28 = vld [vmem:[#allocation7 + $0x250] ss:$24 sps:$4 sm:$0xff]   ;;  %v5351_v29 = vld [vmem:[#allocation7 + $0x57c] ss:$24 sps:$4 sm:$0xff]  }
 0x272   :  { %3644 = vmatprep.subr.bf16.mxu0 %v5267_v25  ;;  %3685 = vmatprep.subr.bf16.mxu1 %v5270_v30  ;;  %v5354_v25 = vld [vmem:[#allocation7 + $0x284] ss:$24 sps:$4 sm:$0xff]   ;;  %v5349_v30 = vld [vmem:[#allocation7 + $0x578] ss:$24 sps:$4 sm:$0xff]  }
 0x275   :  { %3645 = vmatpush1.bf16.msra.mxu0 %v5265_v35  ;;  %3686 = vmatpush1.bf16.msra.mxu1 %v5268_v36  ;;  %v5352_v35 = vld [vmem:[#allocation7 + $0x280] ss:$24 sps:$4 sm:$0xff]   ;;  %v5357_v36 = vld [vmem:[#allocation7 + $0x5ac] ss:$24 sps:$4 sm:$0xff]  }
 0x276   :  { %3696 = vmatprep.subr.bf16.mxu1 %v5273_v40  ;;  %3778 = vmatprep.subr.bf16.mxu0 %v5276_v41  ;;  %v5358_v40 = vld [vmem:[#allocation7 + $0x2b0] ss:$24 sps:$4 sm:$0xff]   ;;  %v5363_v41 = vld [vmem:[#allocation7 + $0x5dc] ss:$24 sps:$4 sm:$0xff]  }
 0x278   :  { %3647 = vmatmul.mubr.bf16.vlgmr.msra.gmra.mrb[0].mxu0 %v6086_v46  ;;  %3688 = vmatmul.mubr.bf16.vlgmr.msra.gmra.mrb[4].mxu1 %v6073_v33 }
 0x279   :  { %3697 = vmatpush1.bf16.msra.mxu1 %v5271_v42  ;;  %3728 = vmatprep.mubr.bf16.mxu1 %v6071_v32  ;;  %v5366_v42 = vld [vmem:[#allocation7 + $0x2e4] ss:$24 sps:$4 sm:$0xff]  }
 0x27a   :  { %3779 = vmatpush1.bf16.msra.mxu0 %v5274_v43  ;;  %3810 = vmatprep.mubr.bf16.mxu0 %v6069_v31  ;;  %v5300_v31 = vld [vmem:[#allocation7 + $0xd4] ss:$24 sps:$4 sm:$0xff]   ;;  %v5361_v43 = vld [vmem:[#allocation7 + $0x5d8] ss:$24 sps:$4 sm:$0xff]  }
 0x27b   :  { %3698 = vmatprep.subr.bf16.mxu1 %v5279_v44  ;;  %3780 = vmatprep.subr.bf16.mxu0 %v5282_v45  ;;  %v5364_v44 = vld [vmem:[#allocation7 + $0x2e0] ss:$24 sps:$4 sm:$0xff]   ;;  %v5369_v45 = vld [vmem:[#allocation7 + $0x60c] ss:$24 sps:$4 sm:$0xff]  }
 0x27d   :  { %3699 = vmatpush1.bf16.msra.mxu1 %v5277_v47  ;;  %v5372_v47 = vld [vmem:[#allocation7 + $0x314] ss:$24 sps:$4 sm:$0xff]  }
 0x27e   :  { %3781 = vmatpush1.bf16.msra.mxu0 %v5280_v22  ;;  %3700 = vmatprep.subr.bf16.mxu1 %v5285_v48  ;;  %v5367_v22 = vld [vmem:[#allocation7 + $0x608] ss:$24 sps:$4 sm:$0xff]  }
 0x27f   :  { %3782 = vmatprep.subr.bf16.mxu0 %v5288_v49  ;;  %v5370_v48 = vld [vmem:[#allocation7 + $0x310] ss:$24 sps:$4 sm:$0xff]   ;;  %v5375_v49 = vld [vmem:[#allocation7 + $0x63c] ss:$24 sps:$4 sm:$0xff]  }
 0x281   :  { %3701 = vmatpush1.bf16.msra.mxu1 %v5283_v50  ;;  %v5378_v50 = vld [vmem:[#allocation7 + $0x344] ss:$24 sps:$4 sm:$0xff]  }
 0x282   :  { %3783 = vmatpush1.bf16.msra.mxu0 %v5286_v51  ;;  %3702 = vmatprep.subr.bf16.mxu1 %v5291_v52  ;;  %v5373_v51 = vld [vmem:[#allocation7 + $0x638] ss:$24 sps:$4 sm:$0xff]  }
 0x283   :  { %3784 = vmatprep.subr.bf16.mxu0 %v5294_v54  ;;  %v5376_v52 = vld [vmem:[#allocation7 + $0x340] ss:$24 sps:$4 sm:$0xff]   ;;  %v5381_v54 = vld [vmem:[#allocation7 + $0x66c] ss:$24 sps:$4 sm:$0xff]  }
 0x285   :  { %3703 = vmatpush1.bf16.msra.mxu1 %v5289_v55  ;;  %v5384_v55 = vld [vmem:[#allocation7 + $0x374] ss:$24 sps:$4 sm:$0xff]  }
 0x286   :  { %3785 = vmatpush1.bf16.msra.mxu0 %v5292_v56  ;;  %3704 = vmatprep.subr.bf16.mxu1 %v5297_v57  ;;  %v5379_v56 = vld [vmem:[#allocation7 + $0x668] ss:$24 sps:$4 sm:$0xff]  }
 0x287   :  { %3786 = vmatprep.subr.bf16.mxu0 %v5300_v31  ;;  %v5382_v57 = vld [vmem:[#allocation7 + $0x370] ss:$24 sps:$4 sm:$0xff]   ;;  %v5387_v31 = vld [vmem:[#allocation7 + $0x69c] ss:$24 sps:$4 sm:$0xff]  }
 0x289   :  { %3705 = vmatpush1.bf16.msra.mxu1 %v5295_v58  ;;  %v5385_v58 = vld [vmem:[#allocation7 + $0x698] ss:$24 sps:$4 sm:$0xff]  }
 0x28a   :  { %3787 = vmatpush1.bf16.msra.mxu0 %v5298_v59  ;;  %3706 = vmatprep.subr.bf16.mxu1 %v5303_v53  ;;  %v5388_v59 = vld [vmem:[#allocation7 + $0x3a0] ss:$24 sps:$4 sm:$0xff]   ;;  %v5393_v53 = vld [vmem:[#allocation7 + $0x6cc] ss:$24 sps:$4 sm:$0xff]  }
 0x28b   :  { %3788 = vmatprep.subr.bf16.mxu0 %v5306_v60  ;;  %v5396_v60 = vld [vmem:[#allocation7 + $0x3d4] ss:$24 sps:$4 sm:$0xff]  }
 0x28d   :  { %3707 = vmatpush1.bf16.msra.mxu1 %v5301_v61  ;;  %v5394_v61 = vld [vmem:[#allocation7 + $0x3d0] ss:$24 sps:$4 sm:$0xff]  }
 0x28e   :  { %3789 = vmatpush1.bf16.msra.mxu0 %v5304_v62  ;;  %3708 = vmatprep.subr.bf16.mxu1 %v5309_v63  ;;  %v5399_v62 = vld [vmem:[#allocation7 + $0x6fc] ss:$24 sps:$4 sm:$0xff]  }
 0x28f   :  { %3790 = vmatprep.subr.bf16.mxu0 %v5312_v0  ;;  %v5402_v63 = vld [vmem:[#allocation7 + $0x404] ss:$24 sps:$4 sm:$0xff]   ;;  %v5397_v0 = vld [vmem:[#allocation7 + $0x6f8] ss:$24 sps:$4 sm:$0xff]  }
 0x291   :  { %3709 = vmatpush1.bf16.msra.mxu1 %v5307_v1  ;;  %v5400_v1 = vld [vmem:[#allocation7 + $0x400] ss:$24 sps:$4 sm:$0xff]  }
 0x292   :  { %3791 = vmatpush1.bf16.msra.mxu0 %v5310_v2  ;;  %3710 = vmatprep.subr.bf16.mxu1 %v5315_v3  ;;  %v5405_v2 = vld [vmem:[#allocation7 + $0x72c] ss:$24 sps:$4 sm:$0xff]  }
 0x293   :  { %3792 = vmatprep.subr.bf16.mxu0 %v5318_v4  ;;  %v5408_v3 = vld [vmem:[#allocation7 + $0x434] ss:$24 sps:$4 sm:$0xff]   ;;  %v5403_v4 = vld [vmem:[#allocation7 + $0x728] ss:$24 sps:$4 sm:$0xff]  }
 0x295   :  { %3711 = vmatpush1.bf16.msra.mxu1 %v5313_v5  ;;  %v5406_v5 = vld [vmem:[#allocation7 + $0x430] ss:$24 sps:$4 sm:$0xff]  }
 0x296   :  { %3793 = vmatpush1.bf16.msra.mxu0 %v5316_v6  ;;  %3712 = vmatprep.subr.bf16.mxu1 %v5321_v7  ;;  %v5411_v6 = vld [vmem:[#allocation7 + $0x75c] ss:$24 sps:$4 sm:$0xff]  }
 0x297   :  { %3794 = vmatprep.subr.bf16.mxu0 %v5324_v8  ;;  %v5414_v7 = vld [vmem:[#allocation7 + $0x464] ss:$24 sps:$4 sm:$0xff]   ;;  %v5409_v8 = vld [vmem:[#allocation7 + $0x758] ss:$24 sps:$4 sm:$0xff]  }
 0x299   :  { %3713 = vmatpush1.bf16.msra.mxu1 %v5319_v9  ;;  %v5412_v9 = vld [vmem:[#allocation7 + $0x460] ss:$24 sps:$4 sm:$0xff]  }
 0x29a   :  { %3795 = vmatpush1.bf16.msra.mxu0 %v5322_v26  ;;  %3714 = vmatprep.subr.bf16.mxu1 %v5327_v11  ;;  %v5417_v26 = vld [vmem:[#allocation7 + $0x78c] ss:$24 sps:$4 sm:$0xff]  }
 0x29b   :  { %3796 = vmatprep.subr.bf16.mxu0 %v5330_v12  ;;  %v5420_v11 = vld [vmem:[#allocation7 + $0x494] ss:$24 sps:$4 sm:$0xff]   ;;  %v5415_v12 = vld [vmem:[#allocation7 + $0x788] ss:$24 sps:$4 sm:$0xff]  }
 0x29d   :  { %3715 = vmatpush1.bf16.msra.mxu1 %v5325_v13  ;;  %v5418_v13 = vld [vmem:[#allocation7 + $0x490] ss:$24 sps:$4 sm:$0xff]  }
 0x29e   :  { %3797 = vmatpush1.bf16.msra.mxu0 %v5328_v14  ;;  %3716 = vmatprep.subr.bf16.mxu1 %v5333_v15  ;;  %v5423_v14 = vld [vmem:[#allocation7 + $0x7bc] ss:$24 sps:$4 sm:$0xff]  }
 0x29f   :  { %3798 = vmatprep.subr.bf16.mxu0 %v5336_v16  ;;  %v5426_v15 = vld [vmem:[#allocation7 + $0x4c4] ss:$24 sps:$4 sm:$0xff]   ;;  %v5421_v16 = vld [vmem:[#allocation7 + $0x7b8] ss:$24 sps:$4 sm:$0xff]  }
 0x2a1   :  { %3717 = vmatpush1.bf16.msra.mxu1 %v5331_v17  ;;  %v5424_v17 = vld [vmem:[#allocation7 + $0x4c0] ss:$24 sps:$4 sm:$0xff]  }
 0x2a2   :  { %3799 = vmatpush1.bf16.msra.mxu0 %v5334_v18  ;;  %3718 = vmatprep.subr.bf16.mxu1 %v5339_v19  ;;  %v5429_v18 = vld [vmem:[#allocation7 + $0x7ec] ss:$24 sps:$4 sm:$0xff]  }
 0x2a3   :  { %3800 = vmatprep.subr.bf16.mxu0 %v5342_v20  ;;  %v5432_v19 = vld [vmem:[#allocation7 + $0x4f4] ss:$24 sps:$4 sm:$0xff]   ;;  %v5427_v20 = vld [vmem:[#allocation7 + $0x7e8] ss:$24 sps:$4 sm:$0xff]  }
 0x2a5   :  { %3719 = vmatpush1.bf16.msra.mxu1 %v5337_v21  ;;  %v5430_v21 = vld [vmem:[#allocation7 + $0x4f0] ss:$24 sps:$4 sm:$0xff]  }
 0x2a6   :  { %3801 = vmatpush1.bf16.msra.mxu0 %v5340_v10  ;;  %3720 = vmatprep.subr.bf16.mxu1 %v5345_v23  ;;  %v5435_v10 = vld [vmem:[#allocation7 + $0x81c] ss:$24 sps:$4 sm:$0xff]  }
 0x2a7   :  { %3802 = vmatprep.subr.bf16.mxu0 %v5348_v24  ;;  %v5438_v23 = vld [vmem:[#allocation7 + $0x524] ss:$24 sps:$4 sm:$0xff]   ;;  %v5433_v24 = vld [vmem:[#allocation7 + $0x818] ss:$24 sps:$4 sm:$0xff]  }
 0x2a9   :  { %3721 = vmatpush1.bf16.msra.mxu1 %v5343_v27  ;;  %v5436_v27 = vld [vmem:[#allocation7 + $0x520] ss:$24 sps:$4 sm:$0xff]  }
 0x2aa   :  { %3803 = vmatpush1.bf16.msra.mxu0 %v5346_v28  ;;  %3722 = vmatprep.subr.bf16.mxu1 %v5351_v29  ;;  %v5441_v28 = vld [vmem:[#allocation7 + $0x84c] ss:$24 sps:$4 sm:$0xff]  }
 0x2ab   :  { %3804 = vmatprep.subr.bf16.mxu0 %v5354_v25  ;;  %v5444_v29 = vld [vmem:[#allocation7 + $0x554] ss:$24 sps:$4 sm:$0xff]   ;;  %v5439_v25 = vld [vmem:[#allocation7 + $0x848] ss:$24 sps:$4 sm:$0xff]  }
 0x2ad   :  { %3723 = vmatpush1.bf16.msra.mxu1 %v5349_v30  ;;  %v5442_v30 = vld [vmem:[#allocation7 + $0x550] ss:$24 sps:$4 sm:$0xff]  }
 0x2ae   :  { %3805 = vmatpush1.bf16.msra.mxu0 %v5352_v35  ;;  %3724 = vmatprep.subr.bf16.mxu1 %v5357_v36  ;;  %v5447_v35 = vld [vmem:[#allocation7 + $0x87c] ss:$24 sps:$4 sm:$0xff]  }
 0x2af   :  { %3806 = vmatprep.subr.bf16.mxu0 %v5360_v37  ;;  %v5450_v36 = vld [vmem:[#allocation7 + $0x584] ss:$24 sps:$4 sm:$0xff]   ;;  %v5445_v37 = vld [vmem:[#allocation7 + $0x878] ss:$24 sps:$4 sm:$0xff]  }
 0x2b1   :  { %3725 = vmatpush1.bf16.msra.mxu1 %v5355_v38  ;;  %v5448_v38 = vld [vmem:[#allocation7 + $0x580] ss:$24 sps:$4 sm:$0xff]  }
 0x2b2   :  { %3807 = vmatpush1.bf16.msra.mxu0 %v5358_v40  ;;  %3726 = vmatprep.subr.bf16.mxu1 %v5363_v41  ;;  %v5453_v40 = vld [vmem:[#allocation7 + $0x8ac] ss:$24 sps:$4 sm:$0xff]  }
 0x2b3   :  { %3808 = vmatprep.subr.bf16.mxu0 %v5366_v42  ;;  %v5456_v41 = vld [vmem:[#allocation7 + $0x5b4] ss:$24 sps:$4 sm:$0xff]   ;;  %v5451_v42 = vld [vmem:[#allocation7 + $0x8a8] ss:$24 sps:$4 sm:$0xff]  }
 0x2b5   :  { %3727 = vmatpush1.bf16.msra.mxu1 %v5361_v43  ;;  %v5454_v43 = vld [vmem:[#allocation7 + $0x5b0] ss:$24 sps:$4 sm:$0xff]  }
 0x2b6   :  { %3809 = vmatpush1.bf16.msra.mxu0 %v5364_v44  ;;  %3737 = vmatprep.subr.bf16.mxu1 %v5369_v45  ;;  %v5459_v44 = vld [vmem:[#allocation7 + $0x8dc] ss:$24 sps:$4 sm:$0xff]  }
 0x2b7   :  { %3819 = vmatprep.subr.bf16.mxu0 %v5372_v47  ;;  %v5462_v45 = vld [vmem:[#allocation7 + $0x5e4] ss:$24 sps:$4 sm:$0xff]   ;;  %v5457_v47 = vld [vmem:[#allocation7 + $0x8d8] ss:$24 sps:$4 sm:$0xff]  }
 0x2b8   :  { %3729 = vmatmul.mubr.bf16.vlgmr.msra.gmra.mrb[4].mxu1 %v6075_v34 }
 0x2b9   :  { %3811 = vmatmul.mubr.bf16.vlgmr.msra.gmra.mrb[4].mxu0 %v6073_v33  ;;  %3738 = vmatpush1.bf16.msra.mxu1 %v5367_v22  ;;  %v5390_v33 = vld [vmem:[#allocation7 + $0x3a4] ss:$24 sps:$4 sm:$0xff]   ;;  %v5460_v22 = vld [vmem:[#allocation7 + $0x5e0] ss:$24 sps:$4 sm:$0xff]  }
 0x2ba   :  { %3769 = vmatprep.mubr.bf16.mxu1 %v6081_v39  ;;  %3820 = vmatpush1.bf16.msra.mxu0 %v5370_v48  ;;  %v5511_v48 = vld [vmem:[#allocation11 + $0x40] sm:$0xff]  }
 0x2bb   :  { %3851 = vmatprep.mubr.bf16.mxu0 %v6071_v32  ;;  %3739 = vmatprep.subr.bf16.mxu1 %v5375_v49  ;;  %v5391_v32 = vld [vmem:[#allocation7 + $0x6c8] ss:$24 sps:$4 sm:$0xff]   ;;  %v5465_v49 = vld [vmem:[#allocation7 + $0x614] ss:$24 sps:$4 sm:$0xff]  }
 0x2bc   :  { %3821 = vmatprep.subr.bf16.mxu0 %v5378_v50  ;;  %v5512_v50 = vld [vmem:[#allocation11] sm:$0xff]  }
 0x2bd   :  { %3740 = vmatpush1.bf16.msra.mxu1 %v5373_v51  ;;  %v5463_v51 = vld [vmem:[#allocation7 + $0x610] ss:$24 sps:$4 sm:$0xff]  }
 0x2be   :  { %3822 = vmatpush1.bf16.msra.mxu0 %v5376_v52  ;;  %3741 = vmatprep.subr.bf16.mxu1 %v5381_v54  ;;  %v5468_v52 = vld [vmem:[#allocation7 + $0x644] ss:$24 sps:$4 sm:$0xff]   ;;  %v5513_v54 = vld [vmem:[#allocation11 + $0x48] sm:$0xff]  }
 0x2bf   :  { %3823 = vmatprep.subr.bf16.mxu0 %v5384_v55  ;;  %v5514_v55 = vld [vmem:[#allocation11 + $0x8] sm:$0xff]  }
 0x2c1   :  { %3742 = vmatpush1.bf16.msra.mxu1 %v5379_v56  ;;  %v5466_v56 = vld [vmem:[#allocation7 + $0x640] ss:$24 sps:$4 sm:$0xff]  }
 0x2c2   :  { %3824 = vmatpush1.bf16.msra.mxu0 %v5382_v57  ;;  %3743 = vmatprep.subr.bf16.mxu1 %v5387_v31  ;;  %v5515_v57 = vld [vmem:[#allocation11 + $0x50] sm:$0xff]  }
 0x2c3   :  { %3825 = vmatprep.subr.bf16.mxu0 %v5390_v33  ;;  %v5471_v31 = vld [vmem:[#allocation7 + $0x674] ss:$24 sps:$4 sm:$0xff]  }
 0x2c4   :  { %v5516_v33 = vld [vmem:[#allocation11 + $0x10] sm:$0xff]  }
 0x2c5   :  { %3744 = vmatpush1.bf16.msra.mxu1 %v5385_v58  ;;  %v5469_v58 = vld [vmem:[#allocation7 + $0x670] ss:$24 sps:$4 sm:$0xff]  }
 0x2c6   :  { %3826 = vmatpush1.bf16.msra.mxu0 %v5388_v59  ;;  %3745 = vmatprep.subr.bf16.mxu1 %v5393_v53  ;;  %v5517_v59 = vld [vmem:[#allocation11 + $0x58] sm:$0xff]  }
 0x2c7   :  { %3827 = vmatprep.subr.bf16.mxu0 %v5396_v60  ;;  %v5474_v53 = vld [vmem:[#allocation7 + $0x6a4] ss:$24 sps:$4 sm:$0xff]   ;;  %v5472_v60 = vld [vmem:[#allocation7 + $0x6a0] ss:$24 sps:$4 sm:$0xff]  }
 0x2c9   :  { %3746 = vmatpush1.bf16.msra.mxu1 %v5391_v32  ;;  %v5519_v32 = vld [vmem:[#allocation11 + $0x60] sm:$0xff]  }
 0x2ca   :  { %3828 = vmatpush1.bf16.msra.mxu0 %v5394_v61  ;;  %3747 = vmatprep.subr.bf16.mxu1 %v5399_v62  ;;  %v5520_v61 = vld [vmem:[#allocation11 + $0x20] sm:$0xff]  }
 0x2cb   :  { %3829 = vmatprep.subr.bf16.mxu0 %v5402_v63  ;;  %v5475_v62 = vld [vmem:[#allocation7 + $0x6d0] ss:$24 sps:$4 sm:$0xff]  }
 0x2cc   :  { %v5521_v63 = vld [vmem:[#allocation11 + $0x68] sm:$0xff]  }
 0x2cd   :  { %3748 = vmatpush1.bf16.msra.mxu1 %v5397_v0  ;;  %v5480_v0 = vld [vmem:[#allocation7 + $0x704] ss:$24 sps:$4 sm:$0xff]  }
 0x2ce   :  { %3830 = vmatpush1.bf16.msra.mxu0 %v5400_v1  ;;  %3749 = vmatprep.subr.bf16.mxu1 %v5405_v2  ;;  %v5522_v1 = vld [vmem:[#allocation11 + $0x28] sm:$0xff]   ;;  %v5478_v2 = vld [vmem:[#allocation7 + $0x700] ss:$24 sps:$4 sm:$0xff]  }
 0x2cf   :  { %3831 = vmatprep.subr.bf16.mxu0 %v5408_v3  ;;  %v5523_v3 = vld [vmem:[#allocation11 + $0x70] sm:$0xff]  }
 0x2d1   :  { %3750 = vmatpush1.bf16.msra.mxu1 %v5403_v4 }
 0x2d2   :  { %3832 = vmatpush1.bf16.msra.mxu0 %v5406_v5  ;;  %3751 = vmatprep.subr.bf16.mxu1 %v5411_v6  ;;  %v5483_v5 = vld [vmem:[#allocation7 + $0x734] ss:$24 sps:$4 sm:$0xff]  }
 0x2d3   :  { %3833 = vmatprep.subr.bf16.mxu0 %v5414_v7 }
 0x2d5   :  { %3752 = vmatpush1.bf16.msra.mxu1 %v5409_v8  ;;  %v5524_v8 = vld [vmem:[#allocation11 + $0x30] sm:$0xff]  }
 0x2d6   :  { %3834 = vmatpush1.bf16.msra.mxu0 %v5412_v9  ;;  %3753 = vmatprep.subr.bf16.mxu1 %v5417_v26  ;;  %v5481_v26 = vld [vmem:[#allocation7 + $0x730] ss:$24 sps:$4 sm:$0xff]  }
 0x2d7   :  { %3835 = vmatprep.subr.bf16.mxu0 %v5420_v11  ;;  %v5525_v11 = vld [vmem:[#allocation11 + $0x78] sm:$0xff]  }
 0x2d9   :  { %3754 = vmatpush1.bf16.msra.mxu1 %v5415_v12  ;;  %v5486_v12 = vld [vmem:[#allocation7 + $0x764] ss:$24 sps:$4 sm:$0xff]  }
 0x2da   :  { %3836 = vmatpush1.bf16.msra.mxu0 %v5418_v13  ;;  %3755 = vmatprep.subr.bf16.mxu1 %v5423_v14  ;;  %v5526_v13 = vld [vmem:[#allocation11 + $0x38] sm:$0xff]  }
 0x2db   :  { %3837 = vmatprep.subr.bf16.mxu0 %v5426_v15  ;;  %v5484_v14 = vld [vmem:[#allocation7 + $0x760] ss:$24 sps:$4 sm:$0xff]   ;;  %v5527_v15 = vld [vmem:[#allocation11 + $0xc0] sm:$0xff]  }
 0x2dd   :  { %3756 = vmatpush1.bf16.msra.mxu1 %v5421_v16  ;;  %v5489_v16 = vld [vmem:[#allocation7 + $0x794] ss:$24 sps:$4 sm:$0xff]  }
 0x2de   :  { %3838 = vmatpush1.bf16.msra.mxu0 %v5424_v17  ;;  %3757 = vmatprep.subr.bf16.mxu1 %v5429_v18  ;;  %v5487_v17 = vld [vmem:[#allocation7 + $0x790] ss:$24 sps:$4 sm:$0xff]   ;;  %v5492_v18 = vld [vmem:[#allocation7 + $0x7c4] ss:$24 sps:$4 sm:$0xff]  }
 0x2df   :  { %3839 = vmatprep.subr.bf16.mxu0 %v5432_v19  ;;  %v5490_v19 = vld [vmem:[#allocation7 + $0x7c0] ss:$24 sps:$4 sm:$0xff]  }
 0x2e1   :  { %3758 = vmatpush1.bf16.msra.mxu1 %v5427_v20  ;;  %v5495_v20 = vld [vmem:[#allocation7 + $0x7f4] ss:$24 sps:$4 sm:$0xff]  }
 0x2e2   :  { %3840 = vmatpush1.bf16.msra.mxu0 %v5430_v21  ;;  %3759 = vmatprep.subr.bf16.mxu1 %v5435_v10  ;;  %v5493_v21 = vld [vmem:[#allocation7 + $0x7f0] ss:$24 sps:$4 sm:$0xff]   ;;  %v5498_v10 = vld [vmem:[#allocation7 + $0x824] ss:$24 sps:$4 sm:$0xff]  }
 0x2e3   :  { %3841 = vmatprep.subr.bf16.mxu0 %v5438_v23  ;;  %v5496_v23 = vld [vmem:[#allocation7 + $0x820] ss:$24 sps:$4 sm:$0xff]  }
 0x2e5   :  { %3760 = vmatpush1.bf16.msra.mxu1 %v5433_v24  ;;  %v5501_v24 = vld [vmem:[#allocation7 + $0x854] ss:$24 sps:$4 sm:$0xff]  }
 0x2e6   :  { %3842 = vmatpush1.bf16.msra.mxu0 %v5436_v27  ;;  %3761 = vmatprep.subr.bf16.mxu1 %v5441_v28  ;;  %v5499_v27 = vld [vmem:[#allocation7 + $0x850] ss:$24 sps:$4 sm:$0xff]   ;;  %v5504_v28 = vld [vmem:[#allocation7 + $0x884] ss:$24 sps:$4 sm:$0xff]  }
 0x2e7   :  { %3843 = vmatprep.subr.bf16.mxu0 %v5444_v29  ;;  %v5502_v29 = vld [vmem:[#allocation7 + $0x880] ss:$24 sps:$4 sm:$0xff]  }
 0x2e9   :  { %3762 = vmatpush1.bf16.msra.mxu1 %v5439_v25  ;;  %v5507_v25 = vld [vmem:[#allocation7 + $0x8b4] ss:$24 sps:$4 sm:$0xff]  }
 0x2ea   :  { %3844 = vmatpush1.bf16.msra.mxu0 %v5442_v30  ;;  %3763 = vmatprep.subr.bf16.mxu1 %v5447_v35  ;;  %v5505_v30 = vld [vmem:[#allocation7 + $0x8b0] ss:$24 sps:$4 sm:$0xff]   ;;  %v5510_v35 = vld [vmem:[#allocation7 + $0x8e4] ss:$24 sps:$4 sm:$0xff]  }
 0x2eb   :  { %3845 = vmatprep.subr.bf16.mxu0 %v5450_v36  ;;  %v5508_v36 = vld [vmem:[#allocation7 + $0x8e0] ss:$24 sps:$4 sm:$0xff]  }
 0x2ed   :  { %3764 = vmatpush1.bf16.msra.mxu1 %v5445_v37  ;;  %v2062_v37 = vlaneseq }
 0x2ee   :  { %3846 = vmatpush1.bf16.msra.mxu0 %v5448_v38  ;;  %3765 = vmatprep.subr.bf16.mxu1 %v5453_v40 }
 0x2ef   :  { %3847 = vmatprep.subr.bf16.mxu0 %v5456_v41  ;;  %v6102_v38 = vshrl.u32 %v2062_v37, 7  ;;  %v6105_v41 = vld [vmem:[#allocation9] sm:$0x3f] }
 0x2f1   :  { %3766 = vmatpush1.bf16.msra.mxu1 %v5451_v42  ;;  %v2064_v40 = vsub.s32 0, %v6102_v38  ;;  %v2068_v42 = vsub.s32 1, %v6102_v38  ;;  %v2080_v37 = vsub.s32 4, %v6102_v38 }
 0x2f2   :  { %3848 = vmatpush1.bf16.msra.mxu0 %v5454_v43  ;;  %3767 = vmatprep.subr.bf16.mxu1 %v5459_v44 }
 0x2f3   :  { %3849 = vmatprep.subr.bf16.mxu0 %v5462_v45  ;;  %v2065_v43 = vrot.slane %v6105_v41, %v2064_v40  ;;  %v2069_v44 = vrot.slane %v6105_v41, %v2068_v42  ;;  %v2084_v42 = vsub.s32 5, %v6102_v38 }
 0x2f5   :  { %3768 = vmatpush1.bf16.msra.mxu1 %v5457_v47 }
 0x2f6   :  { %3850 = vmatpush1.bf16.msra.mxu0 %v5460_v22  ;;  %4921 = vmatprep.subr.bf16.mxu1 %v5511_v48 }
 0x2f7   :  { %3860 = vmatprep.subr.bf16.mxu0 %v5465_v49 }
 0x2f8   :  { %3770 = vmatmul.mubr.bf16.vlgmr.msra.gmra.mrb[4].mxu1 %v6086_v46 }
 0x2f9   :  { %3852 = vmatmul.mubr.bf16.vlgmr.msra.gmra.mrb[4].mxu0 %v6075_v34  ;;  %4922 = vmatpush3.bf16.msra.mxu1 %v5512_v50  ;;  %v5518_v34 = vld [vmem:[#allocation11 + $0x18] sm:$0xff]  }
 0x2fa   :  { %3861 = vmatpush1.bf16.msra.mxu0 %v5463_v51  ;;  %3892 = vmatprep.mubr.bf16.mxu0 %v6081_v39  ;;  %v5477_v39 = vld [vmem:[#allocation7 + $0x6d4] ss:$24 sps:$4 sm:$0xff]  }
 0x2fb   :  { %3862 = vmatprep.subr.bf16.mxu0 %v5468_v52  ;;  %4923 = vmatprep.subr.bf16.mxu1 %v5513_v54 }
 0x2fd   :  { %4924 = vmatpush3.bf16.msra.mxu1 %v5514_v55 }
 0x2fe   :  { %3863 = vmatpush1.bf16.msra.mxu0 %v5466_v56  ;;  %4925 = vmatprep.subr.bf16.mxu1 %v5515_v57  ;;  %v5528_v56 = vld [vmem:[#allocation11 + $0x80] sm:$0xff]  }
 0x2ff   :  { %3864 = vmatprep.subr.bf16.mxu0 %v5471_v31  ;;  %v5529_v31 = vld [vmem:[#allocation11 + $0xc8] sm:$0xff]  }
 0x301   :  { %4926 = vmatpush3.bf16.msra.mxu1 %v5516_v33  ;;  %v5530_v33 = vld [vmem:[#allocation11 + $0x88] sm:$0xff]  }
 0x302   :  { %3865 = vmatpush1.bf16.msra.mxu0 %v5469_v58  ;;  %4927 = vmatprep.subr.bf16.mxu1 %v5517_v59  ;;  %v5531_v58 = vld [vmem:[#allocation11 + $0xd0] sm:$0xff]  }
 0x303   :  { %3866 = vmatprep.subr.bf16.mxu0 %v5474_v53  ;;  %v5532_v59 = vld [vmem:[#allocation11 + $0x90] sm:$0xff]   ;;  %v5533_v53 = vld [vmem:[#allocation11 + $0xd8] sm:$0xff]  }
 0x305   :  { %4928 = vmatpush3.bf16.msra.mxu1 %v5518_v34  ;;  %v5534_v34 = vld [vmem:[#allocation11 + $0x98] sm:$0xff]  }
 0x306   :  { %3867 = vmatpush1.bf16.msra.mxu0 %v5472_v60  ;;  %4929 = vmatprep.subr.bf16.mxu1 %v5519_v32  ;;  %v5535_v60 = vld [vmem:[#allocation11 + $0xe0] sm:$0xff]  }
 0x307   :  { %3868 = vmatprep.subr.bf16.mxu0 %v5477_v39  ;;  %v5536_v32 = vld [vmem:[#allocation11 + $0xa0] sm:$0xff]   ;;  %v5537_v39 = vld [vmem:[#allocation11 + $0xe8] sm:$0xff]  }
 0x309   :  { %4930 = vmatpush3.bf16.msra.mxu1 %v5520_v61  ;;  %v5538_v61 = vld [vmem:[#allocation11 + $0xa8] sm:$0xff]  }
 0x30a   :  { %3869 = vmatpush1.bf16.msra.mxu0 %v5475_v62  ;;  %4931 = vmatprep.subr.bf16.mxu1 %v5521_v63  ;;  %v5539_v62 = vld [vmem:[#allocation11 + $0xf0] sm:$0xff]  }
 0x30b   :  { %v6099_v4 = vpop.f32.mrb[0].mxu1  ;;  %3870 = vmatprep.subr.bf16.mxu0 %v5480_v0  ;;  %v5540_v63 = vld [vmem:[#allocation11 + $0xb0] sm:$0xff]   ;;  %v5541_v0 = vld [vmem:[#allocation11 + $0xf8] sm:$0xff]  }
 0x30c   :  { %v3568_v6 = vpop.f32.mrb[1].mxu1  ;;  %v3567_v45 = vadd.f32 %v6099_v4, %v2065_v43  ;;  %v2076_v4 = vsub.s32 3, %v6102_v38  ;;  %v2081_v43 = vrot.slane %v6105_v41, %v2080_v37 }
 0x30d   :  { %v3570_v7 = vpop.f32.mrb[2].mxu1  ;;  %4932 = vmatpush3.bf16.msra.mxu1 %v5522_v1  ;;  %v3569_v47 = vadd.f32 %v3568_v6, %v2069_v44  ;;  %v5542_v1 = vld [vmem:[#allocation11 + $0xb8] sm:$0xff]   ;;  %v2085_v44 = vrot.slane %v6105_v41, %v2084_v42 }
 0x30e   :  { %3871 = vmatpush1.bf16.msra.mxu0 %v5478_v2  ;;  %v3571_v9 = vpop.f32.mrb[3].mxu1  ;;  %4933 = vmatprep.subr.bf16.mxu1 %v5523_v3  ;;  %v5543_v2 = vld [vmem:[#allocation11 + $0x140] sm:$0xff]   ;;  %v2072_v3 = vsub.s32 2, %v6102_v38  ;;  %v2077_v6 = vrot.slane %v6105_v41, %v2076_v4 }
 0x30f   :  { %3872 = vmatprep.subr.bf16.mxu0 %v5483_v5 }
 0x310   :  { %v2073_v5 = vrot.slane %v6105_v41, %v2072_v3  ;;  %v4434_v41 = vld [vmem:[#allocation6] sm:$0x1] }
 0x311   :  { %4934 = vmatpush3.bf16.msra.mxu1 %v5524_v8  ;;  %5015 = vpush %v4434_v41 }
 0x312   :  { %3873 = vmatpush1.bf16.msra.mxu0 %v5481_v26  ;;  %4935 = vmatprep.subr.bf16.mxu1 %v5525_v11 }
 0x313   :  { %3874 = vmatprep.subr.bf16.mxu0 %v5486_v12 }
 0x315   :  { %4936 = vmatpush3.bf16.msra.mxu1 %v5526_v13 }
 0x316   :  { %3875 = vmatpush1.bf16.msra.mxu0 %v5484_v14  ;;  %4943 = vmatprep.subr.bf16.mxu1 %v5527_v15 }
 0x317   :  { %3876 = vmatprep.subr.bf16.mxu0 %v5489_v16  ;;  %v5544_v16 = vld [vmem:[#allocation11 + $0x100] sm:$0xff]  }
 0x31a   :  { %3877 = vmatpush1.bf16.msra.mxu0 %v5487_v17 }
 0x31b   :  { %3878 = vmatprep.subr.bf16.mxu0 %v5492_v18  ;;  %v5545_v18 = vld [vmem:[#allocation11 + $0x148] sm:$0xff]  }
 0x31e   :  { %3879 = vmatpush1.bf16.msra.mxu0 %v5490_v19  ;;  %v5546_v19 = vld [vmem:[#allocation11 + $0x108] sm:$0xff]  }
 0x31f   :  { %3880 = vmatprep.subr.bf16.mxu0 %v5495_v20  ;;  %v5547_v20 = vld [vmem:[#allocation11 + $0x150] sm:$0xff]  }
 0x322   :  { %3881 = vmatpush1.bf16.msra.mxu0 %v5493_v21  ;;  %v5548_v21 = vld [vmem:[#allocation11 + $0x110] sm:$0xff]  }
 0x323   :  { %3882 = vmatprep.subr.bf16.mxu0 %v5498_v10  ;;  %v5549_v10 = vld [vmem:[#allocation11 + $0x158] sm:$0xff]  }
 0x326   :  { %3883 = vmatpush1.bf16.msra.mxu0 %v5496_v23  ;;  %v5550_v23 = vld [vmem:[#allocation11 + $0x118] sm:$0xff]  }
 0x327   :  { %3884 = vmatprep.subr.bf16.mxu0 %v5501_v24  ;;  %v5551_v24 = vld [vmem:[#allocation11 + $0x160] sm:$0xff]  }
 0x32a   :  { %3885 = vmatpush1.bf16.msra.mxu0 %v5499_v27  ;;  %v5552_v27 = vld [vmem:[#allocation11 + $0x120] sm:$0xff]  }
 0x32b   :  { %3886 = vmatprep.subr.bf16.mxu0 %v5504_v28  ;;  %v5553_v28 = vld [vmem:[#allocation11 + $0x168] sm:$0xff]  }
 0x32e   :  { %3887 = vmatpush1.bf16.msra.mxu0 %v5502_v29  ;;  %v5554_v29 = vld [vmem:[#allocation11 + $0x128] sm:$0xff]  }
 0x32f   :  { %3888 = vmatprep.subr.bf16.mxu0 %v5507_v25  ;;  %v5555_v25 = vld [vmem:[#allocation11 + $0x170] sm:$0xff]  }
 0x332   :  { %3889 = vmatpush1.bf16.msra.mxu0 %v5505_v30  ;;  %v5556_v30 = vld [vmem:[#allocation11 + $0x130] sm:$0xff]  }
 0x333   :  { %3890 = vmatprep.subr.bf16.mxu0 %v5510_v35  ;;  %v5557_v35 = vld [vmem:[#allocation11 + $0x178] sm:$0xff]  }
 0x336   :  { %3891 = vmatpush1.bf16.msra.mxu0 %v5508_v36  ;;  %v5558_v36 = vld [vmem:[#allocation11 + $0x138] sm:$0xff]  }
 0x339   :  { %3893 = vmatmul.mubr.bf16.vlgmr.msra.gmra.mrb[4].mxu0 %v6086_v46 }
 0x342   :  { %s5016_s1 = spop %5015 }
 0x34b   :  { %v3648_v22 = vpop.f32.mrb[0].mxu0 }
 0x34c   :  { %v4988_v46 = vadd.f32 %v3648_v22, %v3567_v45  ;;  %v3650_v48 = vpop.f32.mrb[1].mxu0 }
 0x34d   :  { %v4990_v49 = vadd.f32 %v3650_v48, %v3569_v47  ;;  %v3652_v50 = vpop.f32.mrb[2].mxu0 }
 0x34e   :  { %5561 = vtanh.f32 %v4988_v46  ;;  %v3653_v51 = vpop.f32.mrb[3].mxu0 }
 0x34f   :  { %5563 = vtanh.f32 %v4990_v49 }
 0x358   :  { %v5562_v52 = vpop.eup %5561 }
 0x359   :  { %v5564_v54 = vpop.eup %5563  ;;  %v3907_v57 = vpack.c.bf16 %v5562_v52, %v5562_v52 }
 0x35a   :  { %v3908_v55 = vpack.c.bf16 %v5564_v54, %v5564_v54 }
 0x35c   :  { %4336 = vmatprep.mubr.bf16.mxu1 %v3908_v55 }
 0x35d   :  { %4337 = vmatmul.mubr.bf16.vlgmr.msra.gmra.mrb[8].mxu1 %v3907_v57 }
 0x35e   :  { %4944 = vmatpush3.bf16.msra.mxu1 %v5528_v56 }
 0x35f   :  { %4945 = vmatprep.subr.bf16.mxu1 %v5529_v31 }
 0x362   :  { %4946 = vmatpush3.bf16.msra.mxu1 %v5530_v33 }
 0x363   :  { %4947 = vmatprep.subr.bf16.mxu1 %v5531_v58  ;;  %v4871_v58 = vld [vmem:[#allocation12] ss:$0 sm:$0xff] }
 0x366   :  { %4948 = vmatpush3.bf16.msra.mxu1 %v5532_v59 }
 0x367   :  { %4949 = vmatprep.subr.bf16.mxu1 %v5533_v53 }
 0x36a   :  { %4950 = vmatpush3.bf16.msra.mxu1 %v5534_v34 }
 0x36b   :  { %4951 = vmatprep.subr.bf16.mxu1 %v5535_v60 }
 0x36e   :  { %4952 = vmatpush3.bf16.msra.mxu1 %v5536_v32 }
 0x36f   :  { %4953 = vmatprep.subr.bf16.mxu1 %v5537_v39 }
 0x372   :  { %4954 = vmatpush3.bf16.msra.mxu1 %v5538_v61 }
 0x373   :  { %4955 = vmatprep.subr.bf16.mxu1 %v5539_v62  ;;  %v4425_v62 = vld [vmem:[#allocation14] sm:$0x1] }
 0x376   :  { %4956 = vmatpush3.bf16.msra.mxu1 %v5540_v63 }
 0x377   :  { %4957 = vmatprep.subr.bf16.mxu1 %v5541_v0  ;;  %v4426_v0 = vunpack.c.l.bf16 %v4425_v62 }
 0x37a   :  { %4958 = vmatpush3.bf16.msra.mxu1 %v5542_v1 }
 0x37b   :  { %4965 = vmatprep.subr.bf16.mxu1 %v5543_v2 }
 0x3cb   :  { %v3771_v7 = vpop.f32.mrb[4].mxu1 }
 0x3cc   :  { %v4991_v8 = vadd.f32 %v3771_v7, %v2073_v5  ;;  %v3773_v9 = vpop.f32.mrb[5].mxu1 }
 0x3cd   :  { %v4992_v26 = vadd.f32 %v3773_v9, %v2077_v6  ;;  %v3775_v11 = vpop.f32.mrb[6].mxu1  ;;  %v4430_v6 = vrot.slane %v4426_v0, %v2064_v40  ;;  %v4436_v9 = vstv %s5016_s1 }
 0x3ce   :  { %5565 = vtanh.f32 %v4991_v8  ;;  %v3776_v12 = vpop.f32.mrb[7].mxu1 }
 0x3cf   :  { %5567 = vtanh.f32 %v4992_v26 }
 0x3d8   :  { %v5566_v13 = vpop.eup %5565 }
 0x3d9   :  { %v5568_v14 = vpop.eup %5567  ;;  %v3909_v17 = vpack.c.bf16 %v5566_v13, %v5566_v13 }
 0x3da   :  { %v3910_v15 = vpack.c.bf16 %v5568_v14, %v5568_v14 }
 0x3dc   :  { %4376 = vmatprep.mubr.bf16.mxu1 %v3910_v15 }
 0x3dd   :  { %4377 = vmatmul.mubr.bf16.vlgmr.msra.gmra.mrb[12].mxu1 %v3909_v17 }
 0x3de   :  { %4966 = vmatpush3.bf16.msra.mxu1 %v5544_v16 }
 0x3df   :  { %4967 = vmatprep.subr.bf16.mxu1 %v5545_v18 }
 0x3e2   :  { %4968 = vmatpush3.bf16.msra.mxu1 %v5546_v19 }
 0x3e3   :  { %4969 = vmatprep.subr.bf16.mxu1 %v5547_v20 }
 0x3e6   :  { %4970 = vmatpush3.bf16.msra.mxu1 %v5548_v21 }
 0x3e7   :  { %4971 = vmatprep.subr.bf16.mxu1 %v5549_v10 }
 0x3ea   :  { %4972 = vmatpush3.bf16.msra.mxu1 %v5550_v23 }
 0x3eb   :  { %4973 = vmatprep.subr.bf16.mxu1 %v5551_v24 }
 0x3ee   :  { %4974 = vmatpush3.bf16.msra.mxu1 %v5552_v27 }
 0x3ef   :  { %4975 = vmatprep.subr.bf16.mxu1 %v5553_v28 }
 0x3f2   :  { %4976 = vmatpush3.bf16.msra.mxu1 %v5554_v29 }
 0x3f3   :  { %4977 = vmatprep.subr.bf16.mxu1 %v5555_v25 }
 0x3f6   :  { %4978 = vmatpush3.bf16.msra.mxu1 %v5556_v30 }
 0x3f7   :  { %4979 = vmatprep.subr.bf16.mxu1 %v5557_v35 }
 0x3fa   :  { %4980 = vmatpush3.bf16.msra.mxu1 %v5558_v36 }
 0x40c   :  { %v3894_v45 = vpop.f32.mrb[4].mxu0 }
 0x40d   :  { %v4993_v47 = vadd.f32 %v3894_v45, %v2081_v43  ;;  %v3896_v22 = vpop.f32.mrb[5].mxu0 }
 0x40e   :  { %v4994_v46 = vadd.f32 %v3896_v22, %v2085_v44  ;;  %v3898_v48 = vpop.f32.mrb[6].mxu0 }
 0x40f   :  { %5569 = vtanh.f32 %v4993_v47  ;;  %v3899_v49 = vpop.f32.mrb[7].mxu0 }
 0x410   :  { %5571 = vtanh.f32 %v4994_v46 }
 0x419   :  { %v5570_v50 = vpop.eup %5569 }
 0x41a   :  { %v5572_v51 = vpop.eup %5571  ;;  %v3911_v54 = vpack.c.bf16 %v5570_v50, %v5570_v50 }
 0x41b   :  { %v3912_v52 = vpack.c.bf16 %v5572_v51, %v5572_v51 }
 0x41d   :  { %4416 = vmatprep.mubr.bf16.mxu1 %v3912_v52 }
 0x41e   :  { %4417 = vmatmul.mubr.bf16.vlgmr.msra.gmra.mrb[16].mxu1 %v3911_v54 }
 0x430   :  { %v4937_v55 = vpop.f32.mrb[8].mxu1 }
 0x431   :  { %v4938_v56 = vpop.f32.mrb[9].mxu1 }
 0x432   :  { %v4939_v57 = vadd.f32 %v4938_v56, %v4937_v55  ;;  %v4940_v31 = vpop.f32.mrb[10].mxu1 }
 0x433   :  { %v4941_v33 = vpop.f32.mrb[11].mxu1 }
 0x434   :  { %v4339_v34 = vadd.f32 %v4939_v57, %v4871_v58 }
 0x4b0   :  { %v4959_v59 = vpop.f32.mrb[12].mxu1 }
 0x4b1   :  { %v4960_v53 = vpop.f32.mrb[13].mxu1 }
 0x4b2   :  { %v4961_v60 = vadd.f32 %v4960_v53, %v4959_v59  ;;  %v4962_v32 = vpop.f32.mrb[14].mxu1 }
 0x4b3   :  { %v4963_v39 = vpop.f32.mrb[15].mxu1 }
 0x4b4   :  { %v4379_v61 = vadd.f32 %v4961_v60, %v4339_v34 }
 0x4f1   :  { %v4981_v63 = vpop.f32.mrb[16].mxu1 }
 0x4f2   :  { %v4982_v1 = vpop.f32.mrb[17].mxu1 }
 0x4f3   :  { %v4983_v2 = vadd.f32 %v4982_v1, %v4981_v63  ;;  %v4984_v3 = vpop.f32.mrb[18].mxu1 }
 0x4f4   :  { %v4985_v4 = vpop.f32.mrb[19].mxu1 }
 0x4f5   :  { %v4419_v5 = vadd.f32 %v4983_v2, %v4379_v61 }
 0x4f7   :  { %v4424_v7 = vmax.f32 %v4419_v5, 0.0 }
 0x4f9   :  { %v4431_v8 = vmul.f32 %v4430_v6, %v4424_v7 }
 0x4fb   :  { %4432 = vadd.xlane.f32.xlu0 %v4431_v8 }
 0x588   :  { %v4433_v26 = vpop.xlane.xlu0 %4432 }
 0x589   :  { %v4437_v11 = vadd.f32 %v4436_v9, %v4433_v26 }
 0x58b   :  { %v4920_v12 = vmul.f32 -1.442695, %v4437_v11 }
 0x58d   :  { %5573 = vpow2.f32 %v4920_v12 }
 0x597   :  { %v5574_v13 = vpop.eup %5573 }
 0x598   :  { %v4441_v14 = vadd.f32 1.0, %v5574_v13 }
 0x59a   :  { %5575 = vrcp.f32 %v4441_v14 }
 0x5a4   :  { %v5576_v15 = vpop.eup %5575 }
 0x5a5   :  { %4445 = vst.msk [vmem:[%s6136_s9] sm:$0xff] %vm193_vm0, %v5576_v15 }
 0x5a6   :  { %4450 = vsyncpa [#allocation8], 1 }
 0x5a7   :  { %4451 = vsyncpa [#allocation10], 1 }
 0x5a8   :  { %4452 = vsyncpa [#allocation13], 1 }

</bundles_post_ra>
